<compile_context>
chip_gen: v5e
topology: v5e:2x2
jax: 0.10.0
libtpu: 0.0.40
codegen_flags: <defaults>
</compile_context>

<pallas_src>
import functools

import jax
import jax.numpy as jnp
from jax.experimental import pallas as pl
from jax.experimental.pallas import tpu as pltpu

LRELU_SLOPE = 0.2   # TODO(synk): custom LeakyReLU slope not given in source; PGGAN convention = 0.2
IN_EPS = 1e-5       # nn.InstanceNorm2d default eps
# TODO(synk): custom Conv2d(kernel, stride, pad, in, out) class assumed to be a plain biased conv
#             (no equalized-LR weight scaling visible in the provided source).


# ------------------------------ fused Pallas kernel ------------------------------

def _build_kernel(H, W, mxu_dtype):
    WP = W + 2                 # padded row stride
    SPAN = H * WP              # flattened output positions (incl. 2 gap cols per row)
    inv_hw = 1.0 / float(H * W)

    def kernel(x_ref, w1_ref, b1_ref, w2_ref, b2_ref, coef_ref, mask_ref, pool_ref,
               out_ref, ybuf):
        mask = mask_ref[...]                                   # (1, SPAN) f32, 1 at valid (h, w)

        def conv3x3(window, w_ref, b_ref):
            # window(off) -> (C, SPAN) operand; 9 back-to-back MXU matmuls into an f32 acc.
            acc = jnp.dot(w_ref[0], window(0), preferred_element_type=jnp.float32)
            for k in range(1, 9):
                off = (k // 3) * WP + (k % 3)
                acc = acc + jnp.dot(w_ref[k], window(off),
                                    preferred_element_type=jnp.float32)
            # conv bias (mathematically removed by the following InstanceNorm; kept for fidelity)
            return acc + b_ref[...]

        def adain_lrelu(acc, gamma, beta):
            # masked per-(n, c) InstanceNorm (biased variance) * gamma + beta, then LeakyReLU.
            mu = jnp.sum(acc * mask, axis=-1, keepdims=True) * inv_hw
            d = (acc - mu) * mask
            var = jnp.sum(d * d, axis=-1, keepdims=True) * inv_hw
            y = (acc - mu) * jax.lax.rsqrt(var + IN_EPS) * gamma + beta
            return jnp.where(y >= 0.0, y, LRELU_SLOPE * y)

        # ---- conv1 + AdpIN + LeakyReLU (reads shifted windows straight from the input) ----
        y1 = adain_lrelu(
            conv3x3(lambda off: x_ref[0, :, off:off + SPAN], w1_ref, b1_ref),
            coef_ref[0, 0], coef_ref[0, 1])

        # ---- re-embed y1 into a zero-padded flat layout (VMEM scratch, never hits HBM) ----
        ybuf[...] = jnp.zeros(ybuf.shape, ybuf.dtype)
        ybuf[:, WP + 1: WP + 1 + SPAN] = (y1 * mask).astype(ybuf.dtype)

        # ---- conv2 + AdpIN + LeakyReLU ----
        y2 = adain_lrelu(
            conv3x3(lambda off: ybuf[:, off:off + SPAN], w2_ref, b2_ref),
            coef_ref[0, 2], coef_ref[0, 3])

        # ---- fused 2x2 avg-pool as a matmul against a constant pooling matrix ----
        out_ref[0] = jnp.dot((y2 * mask).astype(pool_ref.dtype), pool_ref[...],
                             preferred_element_type=jnp.float32)

    return kernel


# ----------------------------------- wrapper -------------------------------------

@functools.partial(jax.jit, static_argnames=("mxu_dtype",))
def downlevel_block(x, coeffs, w1, b1, w2, b2, *, mxu_dtype=jnp.bfloat16):
    """DownLevelBlock forward.

    x: (N, Cin, H, W) f32     coeffs: (N, 4*Cout) f32 laid out [gamma1 | beta1 | gamma2 | beta2]
    w1: (Cout, Cin, 3, 3)  b1: (Cout,)   w2: (Cout, Cout, 3, 3)  b2: (Cout,)
    returns: (N, Cout, H//2, W//2) f32
    """
    N, Cin, H, W = x.shape
    Cout = w1.shape[0]
    assert H % 2 == 0 and W % 2 == 0 and coeffs.shape == (N, 4 * Cout)

    WP = W + 2
    SPAN = H * WP
    L = SPAN + 2 * WP + 2          # flat buffer length (max shift offset = 2*WP + 2)
    HWO = (H // 2) * (W // 2)

    # ---- one-pass JAX glue: pad + flatten the input, repack/cast params (NO im2col) ----
    x_pad = jnp.pad(x, ((0, 0), (0, 0), (1, 1), (1, 1)))
    x_flat = x_pad.reshape(N, Cin, (H + 2) * WP)
    x_flat = jnp.pad(x_flat, ((0, 0), (0, 0), (0, L - (H + 2) * WP))).astype(mxu_dtype)

    w1r = jnp.transpose(w1, (2, 3, 0, 1)).reshape(9, Cout, Cin).astype(mxu_dtype)
    w2r = jnp.transpose(w2, (2, 3, 0, 1)).reshape(9, Cout, Cout).astype(mxu_dtype)
    b1c = b1.reshape(Cout, 1).astype(jnp.float32)
    b2c = b2.reshape(Cout, 1).astype(jnp.float32)
    coef = coeffs.reshape(N, 4, Cout, 1).astype(jnp.float32)   # gamma1/beta1/gamma2/beta2 columns

    s = jnp.arange(SPAN)
    col, row = s % WP, s // WP
    valid = col < W
    mask = valid.astype(jnp.float32)[None, :]                  # (1, SPAN) validity mask
    cell = (row // 2) * (W // 2) + col // 2
    pool = jnp.where(valid[:, None] & (cell[:, None] == jnp.arange(HWO)[None, :]),
                     0.25, 0.0).astype(mxu_dtype)              # (SPAN, HWO) avg-pool matrix

    esize = jnp.dtype(mxu_dtype).itemsize
    cost = pl.CostEstimate(
        flops=2 * N * SPAN * 9 * (Cout * Cin + Cout * Cout) + 2 * N * Cout * SPAN * HWO,
        transcendentals=2 * N * Cout,
        bytes_accessed=(x_flat.size + w1r.size + w2r.size + pool.size) * esize
        + (coef.size + mask.size + b1c.size + b2c.size + N * Cout * HWO) * 4,
    )

    kernel = _build_kernel(H, W, mxu_dtype)
    out = pl.pallas_call(
        kernel,
        out_shape=jax.ShapeDtypeStruct((N, Cout, HWO), jnp.float32),
        grid_spec=pltpu.PrefetchScalarGridSpec(
            num_scalar_prefetch=0,
            grid=(N,),
            in_specs=[
                pl.BlockSpec((1, Cin, L), lambda n: (n, 0, 0)),        # flattened padded input
                pl.BlockSpec((9, Cout, Cin), lambda n: (0, 0, 0)),     # conv1 weights per (kh,kw)
                pl.BlockSpec((Cout, 1), lambda n: (0, 0)),             # conv1 bias
                pl.BlockSpec((9, Cout, Cout), lambda n: (0, 0, 0)),    # conv2 weights per (kh,kw)
                pl.BlockSpec((Cout, 1), lambda n: (0, 0)),             # conv2 bias
                pl.BlockSpec((1, 4, Cout, 1), lambda n: (n, 0, 0, 0)),  # AdpIN gamma/beta columns
                pl.BlockSpec((1, SPAN), lambda n: (0, 0)),             # valid-position mask
                pl.BlockSpec((SPAN, HWO), lambda n: (0, 0)),           # 2x2 avg-pool matrix
            ],
            out_specs=pl.BlockSpec((1, Cout, HWO), lambda n: (n, 0, 0)),
            scratch_shapes=[pltpu.VMEM((Cout, L), mxu_dtype)],         # padded y1, VMEM-resident
        ),
        compiler_params=pltpu.CompilerParams(
            dimension_semantics=("parallel",),     # shard samples across TensorCores (v7x megacore)
            vmem_limit_bytes=32 * 1024 * 1024,     # explicit cap; safe on v5e/v6e/v7x
        ),
        cost_estimate=cost,
    )(x_flat, w1r, b1c, w2r, b2c, coef, mask, pool)

    return out.reshape(N, Cout, H // 2, W // 2)


# ------------------------------ pure-JAX reference -------------------------------

def reference_downlevel_block(x, coeffs, w1, b1, w2, b2):
    """f32 reference matching the PyTorch DownLevelBlock forward."""
    def conv3x3(x, w, b):
        y = jax.lax.conv_general_dilated(
            x, w, window_strides=(1, 1), padding=((1, 1), (1, 1)),
            dimension_numbers=("NCHW", "OIHW", "NCHW"),
            precision=jax.lax.Precision.HIGHEST)
        return y + b[None, :, None, None]

    def adain_lrelu(x, gamma, beta):
        mu = x.mean(axis=(2, 3), keepdims=True)
        var = ((x - mu) ** 2).mean(axis=(2, 3), keepdims=True)
        y = (x - mu) * jax.lax.rsqrt(var + IN_EPS)
        y = y * gamma[:, :, None, None] + beta[:, :, None, None]
        return jnp.where(y >= 0, y, LRELU_SLOPE * y)

    C = w1.shape[0]
    x = adain_lrelu(conv3x3(x, w1, b1), coeffs[:, :C], coeffs[:, C:2 * C])
    x = adain_lrelu(conv3x3(x, w2, b2), coeffs[:, 2 * C:3 * C], coeffs[:, 3 * C:4 * C])
    N, Cc, H, W = x.shape
    return x.reshape(N, Cc, H // 2, 2, W // 2, 2).mean(axis=(3, 5))


# ------------------------------------- main ---------------------------------------

if __name__ == "__main__":
    N, Cin, Cout, H, W = 2, 8, 16, 16, 16
    key = jax.random.PRNGKey(0)
    kx, kc, k1, kb1, k2, kb2 = jax.random.split(key, 6)
    x = jax.random.normal(kx, (N, Cin, H, W), jnp.float32)
    coeffs = jax.random.normal(kc, (N, 4 * Cout), jnp.float32)
    w1 = 0.1 * jax.random.normal(k1, (Cout, Cin, 3, 3), jnp.float32)
    b1 = 0.1 * jax.random.normal(kb1, (Cout,), jnp.float32)
    w2 = 0.1 * jax.random.normal(k2, (Cout, Cout, 3, 3), jnp.float32)
    b2 = 0.1 * jax.random.normal(kb2, (Cout,), jnp.float32)

    # correctness: f32-operand kernel vs pure-JAX reference
    out_f32 = downlevel_block(x, coeffs, w1, b1, w2, b2, mxu_dtype=jnp.float32)
    ref = reference_downlevel_block(x, coeffs, w1, b1, w2, b2)
    jax.block_until_ready((out_f32, ref))
    assert out_f32.shape == (N, Cout, H // 2, W // 2)
    err = float(jnp.max(jnp.abs(out_f32 - ref)))
    assert err < 5e-2, f"f32 kernel vs reference mismatch: max abs err = {err}"

    # performance path: bf16 MXU operands, f32 accumulation / norm math
    out = downlevel_block(x, coeffs, w1, b1, w2, b2, mxu_dtype=jnp.bfloat16)
    jax.block_until_ready(out)
    assert out.shape == (N, Cout, H // 2, W // 2)
    print("KERNEL_OK")
</pallas_src>

<mosaic_0001>
module attributes {stable_mosaic.version = 11 : i64} {
  func.func @kernel(%arg0: i32, %arg1: memref<1x8x326xf32, #tpu.memory_space<vmem>>, %arg2: memref<9x16x8xf32, #tpu.memory_space<vmem>>, %arg3: memref<16x1xf32, #tpu.memory_space<vmem>>, %arg4: memref<9x16x16xf32, #tpu.memory_space<vmem>>, %arg5: memref<16x1xf32, #tpu.memory_space<vmem>>, %arg6: memref<1x4x16x1xf32, #tpu.memory_space<vmem>>, %arg7: memref<1x288xf32, #tpu.memory_space<vmem>>, %arg8: memref<288x64xf32, #tpu.memory_space<vmem>>, %arg9: memref<1x16x64xf32, #tpu.memory_space<vmem>>, %arg10: memref<16x326xf32, #tpu.memory_space<vmem>>) attributes {dimension_semantics = [#tpu.dimension_semantics<parallel>], iteration_bounds = array<i64: 2>, scalar_prefetch = 0 : i64, scratch_operands = 1 : i64, tpu.core_type = #tpu.core_type<tc>, window_params = [{transform_indices = @transform_0, window_bounds = array<i64: 1, 8, 326>}, {pipeline_mode = #tpu.pipeline_mode<synchronous>, transform_indices = @transform_1, window_bounds = array<i64: 9, 16, 8>}, {pipeline_mode = #tpu.pipeline_mode<synchronous>, transform_indices = @transform_2, window_bounds = array<i64: 16, 1>}, {pipeline_mode = #tpu.pipeline_mode<synchronous>, transform_indices = @transform_3, window_bounds = array<i64: 9, 16, 16>}, {pipeline_mode = #tpu.pipeline_mode<synchronous>, transform_indices = @transform_4, window_bounds = array<i64: 16, 1>}, {transform_indices = @transform_5, window_bounds = array<i64: 1, 4, 16, 1>}, {pipeline_mode = #tpu.pipeline_mode<synchronous>, transform_indices = @transform_6, window_bounds = array<i64: 1, 288>}, {pipeline_mode = #tpu.pipeline_mode<synchronous>, transform_indices = @transform_7, window_bounds = array<i64: 288, 64>}, {transform_indices = @transform_8, window_bounds = array<i64: 1, 16, 64>}]} {
    %c0 = arith.constant 0 : index
    %c0_0 = arith.constant 0 : index
    %0 = vector.load %arg7[%c0, %c0_0] : memref<1x288xf32, #tpu.memory_space<vmem>>, vector<1x288xf32>
    %c0_1 = arith.constant 0 : index
    %c0_2 = arith.constant 0 : index
    %c0_3 = arith.constant 0 : index
    %1 = vector.load %arg2[%c0_1, %c0_2, %c0_3] : memref<9x16x8xf32, #tpu.memory_space<vmem>>, vector<1x16x8xf32>
    %2 = vector.shape_cast %1 : vector<1x16x8xf32> to vector<16x8xf32>
    %c0_4 = arith.constant 0 : index
    %c0_5 = arith.constant 0 : index
    %c0_6 = arith.constant 0 : index
    %3 = vector.load %arg1[%c0_4, %c0_5, %c0_6] : memref<1x8x326xf32, #tpu.memory_space<vmem>>, vector<1x8x288xf32>
    %4 = vector.shape_cast %3 : vector<1x8x288xf32> to vector<8x288xf32>
    %cst = arith.constant dense<0.000000e+00> : vector<16x288xf32>
    %5 = tpu.matmul %2, %4, %cst {dimension_numbers = #tpu.dot_dimension_numbers<[1], [0], [0], [1], [0, 0, 1, 1], [], []>} : vector<16x8xf32>, vector<8x288xf32>, vector<16x288xf32> -> vector<16x288xf32>
    %c1 = arith.constant 1 : index
    %c0_7 = arith.constant 0 : index
    %c0_8 = arith.constant 0 : index
    %6 = vector.load %arg2[%c1, %c0_7, %c0_8] : memref<9x16x8xf32, #tpu.memory_space<vmem>>, vector<1x16x8xf32>
    %7 = vector.shape_cast %6 : vector<1x16x8xf32> to vector<16x8xf32>
    %c0_9 = arith.constant 0 : index
    %c0_10 = arith.constant 0 : index
    %c1_11 = arith.constant 1 : index
    %8 = vector.load %arg1[%c0_9, %c0_10, %c1_11] : memref<1x8x326xf32, #tpu.memory_space<vmem>>, vector<1x8x288xf32>
    %9 = vector.shape_cast %8 : vector<1x8x288xf32> to vector<8x288xf32>
    %cst_12 = arith.constant dense<0.000000e+00> : vector<16x288xf32>
    %10 = tpu.matmul %7, %9, %cst_12 {dimension_numbers = #tpu.dot_dimension_numbers<[1], [0], [0], [1], [0, 0, 1, 1], [], []>} : vector<16x8xf32>, vector<8x288xf32>, vector<16x288xf32> -> vector<16x288xf32>
    %11 = arith.addf %5, %10 : vector<16x288xf32>
    %c2 = arith.constant 2 : index
    %c0_13 = arith.constant 0 : index
    %c0_14 = arith.constant 0 : index
    %12 = vector.load %arg2[%c2, %c0_13, %c0_14] : memref<9x16x8xf32, #tpu.memory_space<vmem>>, vector<1x16x8xf32>
    %13 = vector.shape_cast %12 : vector<1x16x8xf32> to vector<16x8xf32>
    %c0_15 = arith.constant 0 : index
    %c0_16 = arith.constant 0 : index
    %c2_17 = arith.constant 2 : index
    %14 = vector.load %arg1[%c0_15, %c0_16, %c2_17] : memref<1x8x326xf32, #tpu.memory_space<vmem>>, vector<1x8x288xf32>
    %15 = vector.shape_cast %14 : vector<1x8x288xf32> to vector<8x288xf32>
    %cst_18 = arith.constant dense<0.000000e+00> : vector<16x288xf32>
    %16 = tpu.matmul %13, %15, %cst_18 {dimension_numbers = #tpu.dot_dimension_numbers<[1], [0], [0], [1], [0, 0, 1, 1], [], []>} : vector<16x8xf32>, vector<8x288xf32>, vector<16x288xf32> -> vector<16x288xf32>
    %17 = arith.addf %11, %16 : vector<16x288xf32>
    %c3 = arith.constant 3 : index
    %c0_19 = arith.constant 0 : index
    %c0_20 = arith.constant 0 : index
    %18 = vector.load %arg2[%c3, %c0_19, %c0_20] : memref<9x16x8xf32, #tpu.memory_space<vmem>>, vector<1x16x8xf32>
    %19 = vector.shape_cast %18 : vector<1x16x8xf32> to vector<16x8xf32>
    %c0_21 = arith.constant 0 : index
    %c0_22 = arith.constant 0 : index
    %c18 = arith.constant 18 : index
    %20 = vector.load %arg1[%c0_21, %c0_22, %c18] : memref<1x8x326xf32, #tpu.memory_space<vmem>>, vector<1x8x288xf32>
    %21 = vector.shape_cast %20 : vector<1x8x288xf32> to vector<8x288xf32>
    %cst_23 = arith.constant dense<0.000000e+00> : vector<16x288xf32>
    %22 = tpu.matmul %19, %21, %cst_23 {dimension_numbers = #tpu.dot_dimension_numbers<[1], [0], [0], [1], [0, 0, 1, 1], [], []>} : vector<16x8xf32>, vector<8x288xf32>, vector<16x288xf32> -> vector<16x288xf32>
    %23 = arith.addf %17, %22 : vector<16x288xf32>
    %c4 = arith.constant 4 : index
    %c0_24 = arith.constant 0 : index
    %c0_25 = arith.constant 0 : index
    %24 = vector.load %arg2[%c4, %c0_24, %c0_25] : memref<9x16x8xf32, #tpu.memory_space<vmem>>, vector<1x16x8xf32>
    %25 = vector.shape_cast %24 : vector<1x16x8xf32> to vector<16x8xf32>
    %c0_26 = arith.constant 0 : index
    %c0_27 = arith.constant 0 : index
    %c19 = arith.constant 19 : index
    %26 = vector.load %arg1[%c0_26, %c0_27, %c19] : memref<1x8x326xf32, #tpu.memory_space<vmem>>, vector<1x8x288xf32>
    %27 = vector.shape_cast %26 : vector<1x8x288xf32> to vector<8x288xf32>
    %cst_28 = arith.constant dense<0.000000e+00> : vector<16x288xf32>
    %28 = tpu.matmul %25, %27, %cst_28 {dimension_numbers = #tpu.dot_dimension_numbers<[1], [0], [0], [1], [0, 0, 1, 1], [], []>} : vector<16x8xf32>, vector<8x288xf32>, vector<16x288xf32> -> vector<16x288xf32>
    %29 = arith.addf %23, %28 : vector<16x288xf32>
    %c5 = arith.constant 5 : index
    %c0_29 = arith.constant 0 : index
    %c0_30 = arith.constant 0 : index
    %30 = vector.load %arg2[%c5, %c0_29, %c0_30] : memref<9x16x8xf32, #tpu.memory_space<vmem>>, vector<1x16x8xf32>
    %31 = vector.shape_cast %30 : vector<1x16x8xf32> to vector<16x8xf32>
    %c0_31 = arith.constant 0 : index
    %c0_32 = arith.constant 0 : index
    %c20 = arith.constant 20 : index
    %32 = vector.load %arg1[%c0_31, %c0_32, %c20] : memref<1x8x326xf32, #tpu.memory_space<vmem>>, vector<1x8x288xf32>
    %33 = vector.shape_cast %32 : vector<1x8x288xf32> to vector<8x288xf32>
    %cst_33 = arith.constant dense<0.000000e+00> : vector<16x288xf32>
    %34 = tpu.matmul %31, %33, %cst_33 {dimension_numbers = #tpu.dot_dimension_numbers<[1], [0], [0], [1], [0, 0, 1, 1], [], []>} : vector<16x8xf32>, vector<8x288xf32>, vector<16x288xf32> -> vector<16x288xf32>
    %35 = arith.addf %29, %34 : vector<16x288xf32>
    %c6 = arith.constant 6 : index
    %c0_34 = arith.constant 0 : index
    %c0_35 = arith.constant 0 : index
    %36 = vector.load %arg2[%c6, %c0_34, %c0_35] : memref<9x16x8xf32, #tpu.memory_space<vmem>>, vector<1x16x8xf32>
    %37 = vector.shape_cast %36 : vector<1x16x8xf32> to vector<16x8xf32>
    %c0_36 = arith.constant 0 : index
    %c0_37 = arith.constant 0 : index
    %c36 = arith.constant 36 : index
    %38 = vector.load %arg1[%c0_36, %c0_37, %c36] : memref<1x8x326xf32, #tpu.memory_space<vmem>>, vector<1x8x288xf32>
    %39 = vector.shape_cast %38 : vector<1x8x288xf32> to vector<8x288xf32>
    %cst_38 = arith.constant dense<0.000000e+00> : vector<16x288xf32>
    %40 = tpu.matmul %37, %39, %cst_38 {dimension_numbers = #tpu.dot_dimension_numbers<[1], [0], [0], [1], [0, 0, 1, 1], [], []>} : vector<16x8xf32>, vector<8x288xf32>, vector<16x288xf32> -> vector<16x288xf32>
    %41 = arith.addf %35, %40 : vector<16x288xf32>
    %c7 = arith.constant 7 : index
    %c0_39 = arith.constant 0 : index
    %c0_40 = arith.constant 0 : index
    %42 = vector.load %arg2[%c7, %c0_39, %c0_40] : memref<9x16x8xf32, #tpu.memory_space<vmem>>, vector<1x16x8xf32>
    %43 = vector.shape_cast %42 : vector<1x16x8xf32> to vector<16x8xf32>
    %c0_41 = arith.constant 0 : index
    %c0_42 = arith.constant 0 : index
    %c37 = arith.constant 37 : index
    %44 = vector.load %arg1[%c0_41, %c0_42, %c37] : memref<1x8x326xf32, #tpu.memory_space<vmem>>, vector<1x8x288xf32>
    %45 = vector.shape_cast %44 : vector<1x8x288xf32> to vector<8x288xf32>
    %cst_43 = arith.constant dense<0.000000e+00> : vector<16x288xf32>
    %46 = tpu.matmul %43, %45, %cst_43 {dimension_numbers = #tpu.dot_dimension_numbers<[1], [0], [0], [1], [0, 0, 1, 1], [], []>} : vector<16x8xf32>, vector<8x288xf32>, vector<16x288xf32> -> vector<16x288xf32>
    %47 = arith.addf %41, %46 : vector<16x288xf32>
    %c8 = arith.constant 8 : index
    %c0_44 = arith.constant 0 : index
    %c0_45 = arith.constant 0 : index
    %48 = vector.load %arg2[%c8, %c0_44, %c0_45] : memref<9x16x8xf32, #tpu.memory_space<vmem>>, vector<1x16x8xf32>
    %49 = vector.shape_cast %48 : vector<1x16x8xf32> to vector<16x8xf32>
    %c0_46 = arith.constant 0 : index
    %c0_47 = arith.constant 0 : index
    %c38 = arith.constant 38 : index
    %50 = vector.load %arg1[%c0_46, %c0_47, %c38] : memref<1x8x326xf32, #tpu.memory_space<vmem>>, vector<1x8x288xf32>
    %51 = vector.shape_cast %50 : vector<1x8x288xf32> to vector<8x288xf32>
    %cst_48 = arith.constant dense<0.000000e+00> : vector<16x288xf32>
    %52 = tpu.matmul %49, %51, %cst_48 {dimension_numbers = #tpu.dot_dimension_numbers<[1], [0], [0], [1], [0, 0, 1, 1], [], []>} : vector<16x8xf32>, vector<8x288xf32>, vector<16x288xf32> -> vector<16x288xf32>
    %53 = arith.addf %47, %52 : vector<16x288xf32>
    %c0_49 = arith.constant 0 : index
    %c0_50 = arith.constant 0 : index
    %54 = vector.load %arg3[%c0_49, %c0_50] : memref<16x1xf32, #tpu.memory_space<vmem>>, vector<16x1xf32>
    %55 = vector.broadcast %54 : vector<16x1xf32> to vector<16x288xf32>
    %56 = arith.addf %53, %55 : vector<16x288xf32>
    %c0_51 = arith.constant 0 : index
    %c0_52 = arith.constant 0 : index
    %c0_53 = arith.constant 0 : index
    %c0_54 = arith.constant 0 : index
    %57 = vector.load %arg6[%c0_51, %c0_52, %c0_53, %c0_54] : memref<1x4x16x1xf32, #tpu.memory_space<vmem>>, vector<1x1x16x1xf32>
    %58 = vector.shape_cast %57 : vector<1x1x16x1xf32> to vector<16x1xf32>
    %c0_55 = arith.constant 0 : index
    %c1_56 = arith.constant 1 : index
    %c0_57 = arith.constant 0 : index
    %c0_58 = arith.constant 0 : index
    %59 = vector.load %arg6[%c0_55, %c1_56, %c0_57, %c0_58] : memref<1x4x16x1xf32, #tpu.memory_space<vmem>>, vector<1x1x16x1xf32>
    %60 = vector.shape_cast %59 : vector<1x1x16x1xf32> to vector<16x1xf32>
    %61 = vector.broadcast %0 : vector<1x288xf32> to vector<16x288xf32>
    %62 = arith.mulf %56, %61 : vector<16x288xf32>
    %cst_59 = arith.constant dense<0.000000e+00> : vector<16xf32>
    %63 = vector.multi_reduction <add>, %62, %cst_59 [1] : vector<16x288xf32> to vector<16xf32>
    %64 = vector.shape_cast %63 : vector<16xf32> to vector<16x1xf32>
    %cst_60 = arith.constant 3.906250e-03 : f32
    %65 = vector.broadcast %cst_60 : f32 to vector<16x1xf32>
    %66 = arith.mulf %64, %65 : vector<16x1xf32>
    %67 = vector.broadcast %66 : vector<16x1xf32> to vector<16x288xf32>
    %68 = arith.subf %56, %67 : vector<16x288xf32>
    %69 = vector.broadcast %0 : vector<1x288xf32> to vector<16x288xf32>
    %70 = arith.mulf %68, %69 : vector<16x288xf32>
    %71 = arith.mulf %70, %70 : vector<16x288xf32>
    %cst_61 = arith.constant dense<0.000000e+00> : vector<16xf32>
    %72 = vector.multi_reduction <add>, %71, %cst_61 [1] : vector<16x288xf32> to vector<16xf32>
    %73 = vector.shape_cast %72 : vector<16xf32> to vector<16x1xf32>
    %cst_62 = arith.constant 3.906250e-03 : f32
    %74 = vector.broadcast %cst_62 : f32 to vector<16x1xf32>
    %75 = arith.mulf %73, %74 : vector<16x1xf32>
    %76 = vector.broadcast %66 : vector<16x1xf32> to vector<16x288xf32>
    %77 = arith.subf %56, %76 : vector<16x288xf32>
    %cst_63 = arith.constant 9.99999974E-6 : f32
    %78 = vector.broadcast %cst_63 : f32 to vector<16x1xf32>
    %79 = arith.addf %75, %78 : vector<16x1xf32>
    %80 = math.rsqrt %79 : vector<16x1xf32>
    %81 = vector.broadcast %80 : vector<16x1xf32> to vector<16x288xf32>
    %82 = arith.mulf %77, %81 : vector<16x288xf32>
    %83 = vector.broadcast %58 : vector<16x1xf32> to vector<16x288xf32>
    %84 = arith.mulf %82, %83 : vector<16x288xf32>
    %85 = vector.broadcast %60 : vector<16x1xf32> to vector<16x288xf32>
    %86 = arith.addf %84, %85 : vector<16x288xf32>
    %cst_64 = arith.constant 0.000000e+00 : f32
    %87 = vector.broadcast %cst_64 : f32 to vector<16x288xf32>
    %88 = arith.cmpf oge, %86, %87 : vector<16x288xf32>
    %cst_65 = arith.constant 2.000000e-01 : f32
    %89 = vector.broadcast %cst_65 : f32 to vector<16x288xf32>
    %90 = arith.mulf %89, %86 : vector<16x288xf32>
    %91 = arith.select %88, %86, %90 : vector<16x288xi1>, vector<16x288xf32>
    %cst_66 = arith.constant 0.000000e+00 : f32
    %92 = vector.broadcast %cst_66 : f32 to vector<16x326xf32>
    %c0_67 = arith.constant 0 : index
    %c0_68 = arith.constant 0 : index
    %93 = vector.load %arg10[%c0_67, %c0_68] : memref<16x326xf32, #tpu.memory_space<vmem>>, vector<16x326xf32>
    tpu.vector_store %arg10[%c0_67, %c0_68], %92 {strides = array<i32>} : memref<16x326xf32, #tpu.memory_space<vmem>>, vector<16x326xf32>,
    %94 = vector.broadcast %0 : vector<1x288xf32> to vector<16x288xf32>
    %95 = arith.mulf %91, %94 : vector<16x288xf32>
    %c0_69 = arith.constant 0 : index
    %c19_70 = arith.constant 19 : index
    %96 = vector.load %arg10[%c0_69, %c19_70] : memref<16x326xf32, #tpu.memory_space<vmem>>, vector<16x288xf32>
    tpu.vector_store %arg10[%c0_69, %c19_70], %95 {strides = array<i32>} : memref<16x326xf32, #tpu.memory_space<vmem>>, vector<16x288xf32>,
    %c0_71 = arith.constant 0 : index
    %c0_72 = arith.constant 0 : index
    %c0_73 = arith.constant 0 : index
    %97 = vector.load %arg4[%c0_71, %c0_72, %c0_73] : memref<9x16x16xf32, #tpu.memory_space<vmem>>, vector<1x16x16xf32>
    %98 = vector.shape_cast %97 : vector<1x16x16xf32> to vector<16x16xf32>
    %c0_74 = arith.constant 0 : index
    %c0_75 = arith.constant 0 : index
    %99 = vector.load %arg10[%c0_74, %c0_75] : memref<16x326xf32, #tpu.memory_space<vmem>>, vector<16x288xf32>
    %cst_76 = arith.constant dense<0.000000e+00> : vector<16x288xf32>
    %100 = tpu.matmul %98, %99, %cst_76 {dimension_numbers = #tpu.dot_dimension_numbers<[1], [0], [0], [1], [0, 0, 1, 1], [], []>} : vector<16x16xf32>, vector<16x288xf32>, vector<16x288xf32> -> vector<16x288xf32>
    %c1_77 = arith.constant 1 : index
    %c0_78 = arith.constant 0 : index
    %c0_79 = arith.constant 0 : index
    %101 = vector.load %arg4[%c1_77, %c0_78, %c0_79] : memref<9x16x16xf32, #tpu.memory_space<vmem>>, vector<1x16x16xf32>
    %102 = vector.shape_cast %101 : vector<1x16x16xf32> to vector<16x16xf32>
    %c0_80 = arith.constant 0 : index
    %c1_81 = arith.constant 1 : index
    %103 = vector.load %arg10[%c0_80, %c1_81] : memref<16x326xf32, #tpu.memory_space<vmem>>, vector<16x288xf32>
    %cst_82 = arith.constant dense<0.000000e+00> : vector<16x288xf32>
    %104 = tpu.matmul %102, %103, %cst_82 {dimension_numbers = #tpu.dot_dimension_numbers<[1], [0], [0], [1], [0, 0, 1, 1], [], []>} : vector<16x16xf32>, vector<16x288xf32>, vector<16x288xf32> -> vector<16x288xf32>
    %105 = arith.addf %100, %104 : vector<16x288xf32>
    %c2_83 = arith.constant 2 : index
    %c0_84 = arith.constant 0 : index
    %c0_85 = arith.constant 0 : index
    %106 = vector.load %arg4[%c2_83, %c0_84, %c0_85] : memref<9x16x16xf32, #tpu.memory_space<vmem>>, vector<1x16x16xf32>
    %107 = vector.shape_cast %106 : vector<1x16x16xf32> to vector<16x16xf32>
    %c0_86 = arith.constant 0 : index
    %c2_87 = arith.constant 2 : index
    %108 = vector.load %arg10[%c0_86, %c2_87] : memref<16x326xf32, #tpu.memory_space<vmem>>, vector<16x288xf32>
    %cst_88 = arith.constant dense<0.000000e+00> : vector<16x288xf32>
    %109 = tpu.matmul %107, %108, %cst_88 {dimension_numbers = #tpu.dot_dimension_numbers<[1], [0], [0], [1], [0, 0, 1, 1], [], []>} : vector<16x16xf32>, vector<16x288xf32>, vector<16x288xf32> -> vector<16x288xf32>
    %110 = arith.addf %105, %109 : vector<16x288xf32>
    %c3_89 = arith.constant 3 : index
    %c0_90 = arith.constant 0 : index
    %c0_91 = arith.constant 0 : index
    %111 = vector.load %arg4[%c3_89, %c0_90, %c0_91] : memref<9x16x16xf32, #tpu.memory_space<vmem>>, vector<1x16x16xf32>
    %112 = vector.shape_cast %111 : vector<1x16x16xf32> to vector<16x16xf32>
    %c0_92 = arith.constant 0 : index
    %c18_93 = arith.constant 18 : index
    %113 = vector.load %arg10[%c0_92, %c18_93] : memref<16x326xf32, #tpu.memory_space<vmem>>, vector<16x288xf32>
    %cst_94 = arith.constant dense<0.000000e+00> : vector<16x288xf32>
    %114 = tpu.matmul %112, %113, %cst_94 {dimension_numbers = #tpu.dot_dimension_numbers<[1], [0], [0], [1], [0, 0, 1, 1], [], []>} : vector<16x16xf32>, vector<16x288xf32>, vector<16x288xf32> -> vector<16x288xf32>
    %115 = arith.addf %110, %114 : vector<16x288xf32>
    %c4_95 = arith.constant 4 : index
    %c0_96 = arith.constant 0 : index
    %c0_97 = arith.constant 0 : index
    %116 = vector.load %arg4[%c4_95, %c0_96, %c0_97] : memref<9x16x16xf32, #tpu.memory_space<vmem>>, vector<1x16x16xf32>
    %117 = vector.shape_cast %116 : vector<1x16x16xf32> to vector<16x16xf32>
    %c0_98 = arith.constant 0 : index
    %c19_99 = arith.constant 19 : index
    %118 = vector.load %arg10[%c0_98, %c19_99] : memref<16x326xf32, #tpu.memory_space<vmem>>, vector<16x288xf32>
    %cst_100 = arith.constant dense<0.000000e+00> : vector<16x288xf32>
    %119 = tpu.matmul %117, %118, %cst_100 {dimension_numbers = #tpu.dot_dimension_numbers<[1], [0], [0], [1], [0, 0, 1, 1], [], []>} : vector<16x16xf32>, vector<16x288xf32>, vector<16x288xf32> -> vector<16x288xf32>
    %120 = arith.addf %115, %119 : vector<16x288xf32>
    %c5_101 = arith.constant 5 : index
    %c0_102 = arith.constant 0 : index
    %c0_103 = arith.constant 0 : index
    %121 = vector.load %arg4[%c5_101, %c0_102, %c0_103] : memref<9x16x16xf32, #tpu.memory_space<vmem>>, vector<1x16x16xf32>
    %122 = vector.shape_cast %121 : vector<1x16x16xf32> to vector<16x16xf32>
    %c0_104 = arith.constant 0 : index
    %c20_105 = arith.constant 20 : index
    %123 = vector.load %arg10[%c0_104, %c20_105] : memref<16x326xf32, #tpu.memory_space<vmem>>, vector<16x288xf32>
    %cst_106 = arith.constant dense<0.000000e+00> : vector<16x288xf32>
    %124 = tpu.matmul %122, %123, %cst_106 {dimension_numbers = #tpu.dot_dimension_numbers<[1], [0], [0], [1], [0, 0, 1, 1], [], []>} : vector<16x16xf32>, vector<16x288xf32>, vector<16x288xf32> -> vector<16x288xf32>
    %125 = arith.addf %120, %124 : vector<16x288xf32>
    %c6_107 = arith.constant 6 : index
    %c0_108 = arith.constant 0 : index
    %c0_109 = arith.constant 0 : index
    %126 = vector.load %arg4[%c6_107, %c0_108, %c0_109] : memref<9x16x16xf32, #tpu.memory_space<vmem>>, vector<1x16x16xf32>
    %127 = vector.shape_cast %126 : vector<1x16x16xf32> to vector<16x16xf32>
    %c0_110 = arith.constant 0 : index
    %c36_111 = arith.constant 36 : index
    %128 = vector.load %arg10[%c0_110, %c36_111] : memref<16x326xf32, #tpu.memory_space<vmem>>, vector<16x288xf32>
    %cst_112 = arith.constant dense<0.000000e+00> : vector<16x288xf32>
    %129 = tpu.matmul %127, %128, %cst_112 {dimension_numbers = #tpu.dot_dimension_numbers<[1], [0], [0], [1], [0, 0, 1, 1], [], []>} : vector<16x16xf32>, vector<16x288xf32>, vector<16x288xf32> -> vector<16x288xf32>
    %130 = arith.addf %125, %129 : vector<16x288xf32>
    %c7_113 = arith.constant 7 : index
    %c0_114 = arith.constant 0 : index
    %c0_115 = arith.constant 0 : index
    %131 = vector.load %arg4[%c7_113, %c0_114, %c0_115] : memref<9x16x16xf32, #tpu.memory_space<vmem>>, vector<1x16x16xf32>
    %132 = vector.shape_cast %131 : vector<1x16x16xf32> to vector<16x16xf32>
    %c0_116 = arith.constant 0 : index
    %c37_117 = arith.constant 37 : index
    %133 = vector.load %arg10[%c0_116, %c37_117] : memref<16x326xf32, #tpu.memory_space<vmem>>, vector<16x288xf32>
    %cst_118 = arith.constant dense<0.000000e+00> : vector<16x288xf32>
    %134 = tpu.matmul %132, %133, %cst_118 {dimension_numbers = #tpu.dot_dimension_numbers<[1], [0], [0], [1], [0, 0, 1, 1], [], []>} : vector<16x16xf32>, vector<16x288xf32>, vector<16x288xf32> -> vector<16x288xf32>
    %135 = arith.addf %130, %134 : vector<16x288xf32>
    %c8_119 = arith.constant 8 : index
    %c0_120 = arith.constant 0 : index
    %c0_121 = arith.constant 0 : index
    %136 = vector.load %arg4[%c8_119, %c0_120, %c0_121] : memref<9x16x16xf32, #tpu.memory_space<vmem>>, vector<1x16x16xf32>
    %137 = vector.shape_cast %136 : vector<1x16x16xf32> to vector<16x16xf32>
    %c0_122 = arith.constant 0 : index
    %c38_123 = arith.constant 38 : index
    %138 = vector.load %arg10[%c0_122, %c38_123] : memref<16x326xf32, #tpu.memory_space<vmem>>, vector<16x288xf32>
    %cst_124 = arith.constant dense<0.000000e+00> : vector<16x288xf32>
    %139 = tpu.matmul %137, %138, %cst_124 {dimension_numbers = #tpu.dot_dimension_numbers<[1], [0], [0], [1], [0, 0, 1, 1], [], []>} : vector<16x16xf32>, vector<16x288xf32>, vector<16x288xf32> -> vector<16x288xf32>
    %140 = arith.addf %135, %139 : vector<16x288xf32>
    %c0_125 = arith.constant 0 : index
    %c0_126 = arith.constant 0 : index
    %141 = vector.load %arg5[%c0_125, %c0_126] : memref<16x1xf32, #tpu.memory_space<vmem>>, vector<16x1xf32>
    %142 = vector.broadcast %141 : vector<16x1xf32> to vector<16x288xf32>
    %143 = arith.addf %140, %142 : vector<16x288xf32>
    %c0_127 = arith.constant 0 : index
    %c2_128 = arith.constant 2 : index
    %c0_129 = arith.constant 0 : index
    %c0_130 = arith.constant 0 : index
    %144 = vector.load %arg6[%c0_127, %c2_128, %c0_129, %c0_130] : memref<1x4x16x1xf32, #tpu.memory_space<vmem>>, vector<1x1x16x1xf32>
    %145 = vector.shape_cast %144 : vector<1x1x16x1xf32> to vector<16x1xf32>
    %c0_131 = arith.constant 0 : index
    %c3_132 = arith.constant 3 : index
    %c0_133 = arith.constant 0 : index
    %c0_134 = arith.constant 0 : index
    %146 = vector.load %arg6[%c0_131, %c3_132, %c0_133, %c0_134] : memref<1x4x16x1xf32, #tpu.memory_space<vmem>>, vector<1x1x16x1xf32>
    %147 = vector.shape_cast %146 : vector<1x1x16x1xf32> to vector<16x1xf32>
    %148 = vector.broadcast %0 : vector<1x288xf32> to vector<16x288xf32>
    %149 = arith.mulf %143, %148 : vector<16x288xf32>
    %cst_135 = arith.constant dense<0.000000e+00> : vector<16xf32>
    %150 = vector.multi_reduction <add>, %149, %cst_135 [1] : vector<16x288xf32> to vector<16xf32>
    %151 = vector.shape_cast %150 : vector<16xf32> to vector<16x1xf32>
    %cst_136 = arith.constant 3.906250e-03 : f32
    %152 = vector.broadcast %cst_136 : f32 to vector<16x1xf32>
    %153 = arith.mulf %151, %152 : vector<16x1xf32>
    %154 = vector.broadcast %153 : vector<16x1xf32> to vector<16x288xf32>
    %155 = arith.subf %143, %154 : vector<16x288xf32>
    %156 = vector.broadcast %0 : vector<1x288xf32> to vector<16x288xf32>
    %157 = arith.mulf %155, %156 : vector<16x288xf32>
    %158 = arith.mulf %157, %157 : vector<16x288xf32>
    %cst_137 = arith.constant dense<0.000000e+00> : vector<16xf32>
    %159 = vector.multi_reduction <add>, %158, %cst_137 [1] : vector<16x288xf32> to vector<16xf32>
    %160 = vector.shape_cast %159 : vector<16xf32> to vector<16x1xf32>
    %cst_138 = arith.constant 3.906250e-03 : f32
    %161 = vector.broadcast %cst_138 : f32 to vector<16x1xf32>
    %162 = arith.mulf %160, %161 : vector<16x1xf32>
    %163 = vector.broadcast %153 : vector<16x1xf32> to vector<16x288xf32>
    %164 = arith.subf %143, %163 : vector<16x288xf32>
    %cst_139 = arith.constant 9.99999974E-6 : f32
    %165 = vector.broadcast %cst_139 : f32 to vector<16x1xf32>
    %166 = arith.addf %162, %165 : vector<16x1xf32>
    %167 = math.rsqrt %166 : vector<16x1xf32>
    %168 = vector.broadcast %167 : vector<16x1xf32> to vector<16x288xf32>
    %169 = arith.mulf %164, %168 : vector<16x288xf32>
    %170 = vector.broadcast %145 : vector<16x1xf32> to vector<16x288xf32>
    %171 = arith.mulf %169, %170 : vector<16x288xf32>
    %172 = vector.broadcast %147 : vector<16x1xf32> to vector<16x288xf32>
    %173 = arith.addf %171, %172 : vector<16x288xf32>
    %cst_140 = arith.constant 0.000000e+00 : f32
    %174 = vector.broadcast %cst_140 : f32 to vector<16x288xf32>
    %175 = arith.cmpf oge, %173, %174 : vector<16x288xf32>
    %cst_141 = arith.constant 2.000000e-01 : f32
    %176 = vector.broadcast %cst_141 : f32 to vector<16x288xf32>
    %177 = arith.mulf %176, %173 : vector<16x288xf32>
    %178 = arith.select %175, %173, %177 : vector<16x288xi1>, vector<16x288xf32>
    %179 = vector.broadcast %0 : vector<1x288xf32> to vector<16x288xf32>
    %180 = arith.mulf %178, %179 : vector<16x288xf32>
    %c0_142 = arith.constant 0 : index
    %c0_143 = arith.constant 0 : index
    %181 = vector.load %arg8[%c0_142, %c0_143] : memref<288x64xf32, #tpu.memory_space<vmem>>, vector<288x64xf32>
    %cst_144 = arith.constant dense<0.000000e+00> : vector<16x64xf32>
    %182 = tpu.matmul %180, %181, %cst_144 {dimension_numbers = #tpu.dot_dimension_numbers<[1], [0], [0], [1], [0, 0, 1, 1], [], []>} : vector<16x288xf32>, vector<288x64xf32>, vector<16x64xf32> -> vector<16x64xf32>
    %c0_145 = arith.constant 0 : index
    %c0_146 = arith.constant 0 : index
    %c0_147 = arith.constant 0 : index
    %183 = vector.load %arg9[%c0_145, %c0_146, %c0_147] : memref<1x16x64xf32, #tpu.memory_space<vmem>>, vector<1x16x64xf32>
    %184 = vector.shape_cast %183 : vector<1x16x64xf32> to vector<16x64xf32>
    %185 = vector.shape_cast %182 : vector<16x64xf32> to vector<1x16x64xf32>
    tpu.vector_store %arg9[%c0_145, %c0_146, %c0_147], %185 {strides = array<i32>} : memref<1x16x64xf32, #tpu.memory_space<vmem>>, vector<1x16x64xf32>,
    return
  }
  func.func @transform_0(%arg0: i32) -> (i32, i32, i32) {
    %c0_i32 = arith.constant 0 : i32
    %c0_i32_0 = arith.constant 0 : i32
    %c0_i32_1 = arith.constant 0 : i32
    return %arg0, %c0_i32, %c0_i32_0 : i32, i32, i32
  }
  func.func @transform_1(%arg0: i32) -> (i32, i32, i32) {
    %c0_i32 = arith.constant 0 : i32
    %c0_i32_0 = arith.constant 0 : i32
    %c0_i32_1 = arith.constant 0 : i32
    %c0_i32_2 = arith.constant 0 : i32
    return %c0_i32, %c0_i32_0, %c0_i32_1 : i32, i32, i32
  }
  func.func @transform_2(%arg0: i32) -> (i32, i32) {
    %c0_i32 = arith.constant 0 : i32
    %c0_i32_0 = arith.constant 0 : i32
    %c0_i32_1 = arith.constant 0 : i32
    return %c0_i32, %c0_i32_0 : i32, i32
  }
  func.func @transform_3(%arg0: i32) -> (i32, i32, i32) {
    %c0_i32 = arith.constant 0 : i32
    %c0_i32_0 = arith.constant 0 : i32
    %c0_i32_1 = arith.constant 0 : i32
    %c0_i32_2 = arith.constant 0 : i32
    return %c0_i32, %c0_i32_0, %c0_i32_1 : i32, i32, i32
  }
  func.func @transform_4(%arg0: i32) -> (i32, i32) {
    %c0_i32 = arith.constant 0 : i32
    %c0_i32_0 = arith.constant 0 : i32
    %c0_i32_1 = arith.constant 0 : i32
    return %c0_i32, %c0_i32_0 : i32, i32
  }
  func.func @transform_5(%arg0: i32) -> (i32, i32, i32, i32) {
    %c0_i32 = arith.constant 0 : i32
    %c0_i32_0 = arith.constant 0 : i32
    %c0_i32_1 = arith.constant 0 : i32
    %c0_i32_2 = arith.constant 0 : i32
    return %arg0, %c0_i32, %c0_i32_0, %c0_i32_1 : i32, i32, i32, i32
  }
  func.func @transform_6(%arg0: i32) -> (i32, i32) {
    %c0_i32 = arith.constant 0 : i32
    %c0_i32_0 = arith.constant 0 : i32
    %c0_i32_1 = arith.constant 0 : i32
    return %c0_i32, %c0_i32_0 : i32, i32
  }
  func.func @transform_7(%arg0: i32) -> (i32, i32) {
    %c0_i32 = arith.constant 0 : i32
    %c0_i32_0 = arith.constant 0 : i32
    %c0_i32_1 = arith.constant 0 : i32
    return %c0_i32, %c0_i32_0 : i32, i32
  }
  func.func @transform_8(%arg0: i32) -> (i32, i32, i32) {
    %c0_i32 = arith.constant 0 : i32
    %c0_i32_0 = arith.constant 0 : i32
    %c0_i32_1 = arith.constant 0 : i32
    return %arg0, %c0_i32, %c0_i32_0 : i32, i32, i32
  }
}

</mosaic_0001>

<bundles_post_ra>
// kernel: downlevel_block.1
= control target key start
LH: loop header
LB: loop body
LE: loop exit
PB: predicated region body
PF: predicated region fallthrough
CT: control target
= control target key end

     0   :  { %s3067_s27 = smov 0   ;;  %s3687_s0 = inlined_call_operand.vmem [shape: f32[2,8,326], index: 0, kind: input, shape index: {}]   ;;  %s3688_s1 = inlined_call_operand.vmem [shape: f32[9,16,8], index: 1, kind: input, shape index: {}]   ;;  %s3689_s2 = inlined_call_operand.vmem [shape: f32[16,1], index: 2, kind: input, shape index: {}]   ;;  %s3690_s3 = inlined_call_operand.vmem [shape: f32[9,16,16], index: 3, kind: input, shape index: {}]   ;;  %s3691_s4 = inlined_call_operand.vmem [shape: f32[16,1], index: 4, kind: input, shape index: {}]   ;;  %s3692_s5 = inlined_call_operand.vmem [shape: f32[2,4,16,1], index: 5, kind: input, shape index: {}]   ;;  %s3693_s6 = inlined_call_operand.vmem [shape: f32[1,288], index: 6, kind: input, shape index: {}]   ;;  %s3694_s7 = inlined_call_operand.vmem [shape: f32[288,64], index: 7, kind: input, shape index: {}]   ;;  %s3695_s8 = inlined_call_operand.vmem [shape: f32[2,16,64], index: 8, kind: output, shape index: {}]  }
   0x1 LB: > { %s2649_s28 = sadd.s32 4294967295, %s3009_s27   ;;  %p2653_p0 = scmp.ge.s32.totalorder %s3009_s27, 1  ;;  %s3009_s27 = sphi %s3067_s27, %s18_s27  }
   0x2   : > { %p272_p1 = scmp.lt.s32.totalorder %s3009_s27, 3 }
   0x4   : > { %p273_p2 = pnand %p2653_p0, %p272_p1 }
   0x5   : > { %p311_p3 = scmp.lt.s32.totalorder (!%p273_p2), %s2649_s28, 1  ;;  %s3011_s11 = smov (!%p273_p2), 126  }
   0x6   : > { %276 = sbr.rel (%p273_p2) target bundleno = 1565 (0x61d), region = 52  ;;  %s3012_s12 = smov (!%p273_p2), 127  }
   0x7   : > { %s3013_s13 = smov (!%p273_p2), 110   ;;  %s3014_s16 = smov (!%p273_p2), 109  }
   0x8   : > { %s3015_s17 = smov (!%p273_p2), 108   ;;  %s3016_s18 = smov (!%p273_p2), 92  }
   0x9   : > { %s3017_s19 = smov (!%p273_p2), 91   ;;  %s3018_s20 = smov (!%p273_p2), 90  }
   0xa   : > { %s3021_s9 = smov (!%p273_p2), 19  }
   0xb   : > { %s3697_s28 = smov (!%p311_p3, %s2649_s28), 1  ;;  %v3094_v5 = vld [vmem:[%s3688_s1] sm:$0xff]  ;;  %vm350_vm0 = vcmask 64512   ;;  %v3115_v7 = vld [vmem:[%s3688_s1 + $0x8] sm:$0xff]  ;;  %vm344_vm1 = vcmask 1039360   ;;  %v2660_v14 = vld [vmem:[%s3688_s1 + $0x18] sm:$0xff] }
   0xc   : > { %s2812_s29 = smul.u32 24, %s3697_s28  ;;  %v2659_v15 = vld [vmem:[%s3688_s1 + $0x10] sm:$0xff]  ;;  %vm510_vm2 = vcmask 1031168   ;;  %vm606_vm3 = vcmask 900096   ;;  %v2673_v28 = vld [vmem:[%s3688_s1 + $0x20] sm:$0xff]  ;;  %vm798_vm4 = vcmask 883712  }
   0xd   : > { %vm702_vm5 = vcmask 891904   ;;  %v2674_v35 = vld [vmem:[%s3688_s1 + $0x28] sm:$0xff]  ;;  %vm894_vm6 = vcmask 752640   ;;  %v2681_v41 = vld [vmem:[%s3688_s1 + $0x30] sm:$0xff]  ;;  %v2682_v47 = vld [vmem:[%s3688_s1 + $0x38] sm:$0xff]  ;;  %vm990_vm7 = vcmask 744448  }
   0xe   : > { %s315_s10 = scalar_lea.vmem %s3687_s0, %s2812_s29  ;;  %v2697_v51 = vld [vmem:[%s3688_s1 + $0x50] sm:$0xff]  ;;  %v2689_v52 = vld [vmem:[%s3688_s1 + $0x40] sm:$0xff]  ;;  %v2698_v54 = vld [vmem:[%s3688_s1 + $0x58] sm:$0xff]  ;;  %vm1086_vm8 = vcmask 736256   ;;  %vm1210_vm9 = vcmask 261120   ;;  %s2809_s25 = sshll.u32 %s3697_s28, 6 }
   0xf   : > { %v329_v0 = vld [vmem:[%s315_s10] sm:$0xff]  ;;  %v330_v1 = vld [vmem:[%s315_s10 + $0x8] sm:$0xff]  ;;  %v3081_v2 = vld [vmem:[%s315_s10 + $0x10] sm:$0xff]  ;;  %s3267_s30 = scalar_lea.vmem %s3692_s5, %s2809_s25  ;;  %s2810_s23 = sshll.u32 %s3697_s28, 4 }
  0x10   : > { %v2837_v3 = vpack.i.bf16 %v330_v1, %v329_v0  ;;  %v2842_v4 = vpack.i.bf16 %v3081_v2, %v330_v1  ;;  %447 = vmatpush.msra.mxu3 %v329_v0  ;;  %v2847_v6 = vpack.i.bf16 %v329_v0, %v3081_v2  ;;  %v2690_v55 = vld [vmem:[%s3688_s1 + $0x48] sm:$0xff]  ;;  %v2705_v61 = vld [vmem:[%s3688_s1 + $0x60] sm:$0xff]  ;;  %s325_s26 = scalar_lea.vmem %s3695_s8, %s2810_s23 }
  0x11   : > { %2667 = vmatmul.msk.f32.vlgmr.msra.gmra.mxu3 %vm350_vm0, %v3094_v5 }
  0x12   : > { %2838 = vrot.lane.b32.xlu1 %v2837_v3, %s3011_s11  ;;  %2833 = vrot.lane.b32.xlu0 %v2837_v3, %s3012_s12 }
  0x13   : > { %2843 = vrot.lane.b32.xlu2 %v2842_v4, %s3013_s13 }
  0x19   : > { %2668 = vmatmul.msk.f32.gmra.mxu3 %vm350_vm0, %v3115_v7 }
  0x1a   : > { %508 = vrot.lane.b32.xlu1 %v3081_v2, %s3011_s11  ;;  %342 = vrot.lane.b32.xlu0 %v3081_v2, %s3012_s12 }
  0x1b   : > { %600 = vrot.lane.b32.xlu2 %v329_v0, %s3013_s13 }
  0x22   : > { %2848 = vrot.lane.b32.xlu0 %v2847_v6, %s3014_s16  ;;  %698 = vrot.lane.b32.xlu1 %v330_v1, %s3014_s16 }
  0x23   : > { %2853 = vrot.lane.b32.xlu2 %v2837_v3, %s3015_s17 }
  0x2a   : > { %2858 = vrot.lane.b32.xlu0 %v2837_v3, %s3016_s18  ;;  %796 = vrot.lane.b32.xlu1 %v3081_v2, %s3015_s17  ;;  %v2713_v3 = vld [vmem:[%s3688_s1 + $0x70] sm:$0xff] }
  0x2b   : > { %892 = vrot.lane.b32.xlu2 %v3081_v2, %s3016_s18 }
  0x32   : > { %2863 = vrot.lane.b32.xlu0 %v2842_v4, %s3017_s19  ;;  %984 = vrot.lane.b32.xlu1 %v329_v0, %s3017_s19 }
  0x33   : > { %2868 = vrot.lane.b32.xlu2 %v2847_v6, %s3018_s20  ;;  %v1174_v6 = vld [vmem:[%s3689_s2 + $0x8] sm:$0xff] }
  0x3a   : > { %1082 = vrot.lane.b32.xlu0 %v330_v1, %s3018_s20 }
  0x6d   : > { %v2844_v8 = vpop.permute.xlu2 %2843 }
  0x6e   : > { %v2845_v20 = vunpack.i.l.bf16 %v2844_v8  ;;  %v2846_v29 = vunpack.i.h.bf16 %v2844_v8  ;;  %v2721_v8 = vld [vmem:[%s3688_s1 + $0x80] sm:$0xff] }
  0x70   : > { %v608_v31 = vsel %vm606_vm3, %v2845_v20, %v2846_v29 }
  0x75   : > { %v601_v9 = vpop.permute.xlu2 %600 }
  0x76   : > { %v607_v30 = vsel %vm606_vm3, %v601_v9, %v2845_v20  ;;  %v2722_v9 = vld [vmem:[%s3688_s1 + $0x88] sm:$0xff] }
  0x7d   : > { %v2854_v19 = vpop.permute.xlu2 %2853 }
  0x7e   : > { %v2856_v24 = vunpack.i.h.bf16 %v2854_v19  ;;  %v2855_v25 = vunpack.i.l.bf16 %v2854_v19 }
  0x80   : > { %v799_v32 = vsel %vm798_vm4, %v2855_v25, %v2856_v24 }
  0x84   : > { %v2839_v10 = vpop.permute.xlu1 %2838  ;;  %v2834_v11 = vpop.permute.xlu0 %2833 }
  0x85   : > { %v2836_v12 = vunpack.i.h.bf16 %v2834_v11  ;;  %v2835_v13 = vunpack.i.l.bf16 %v2834_v11  ;;  %v2840_v17 = vunpack.i.l.bf16 %v2839_v10  ;;  %v2841_v18 = vunpack.i.h.bf16 %v2839_v10  ;;  %v893_v40 = vpop.permute.xlu2 %892  ;;  %v1173_v10 = vld [vmem:[%s3689_s2] sm:$0xff] }
  0x87   : > { %v345_v16 = vsel %vm344_vm1, %v2835_v13, %v2836_v12  ;;  %v511_v23 = vsel %vm510_vm2, %v2840_v17, %v2841_v18 }
  0x88   : > { %372 = vmatpush.msra.mxu0 %v345_v16  ;;  %2811 = vmatpush.msra.mxu1 %v345_v16 }
  0x89   : > { %2662 = vmatmul.msk.f32.vlgmr.msra.gmra.mxu1 %vm350_vm0, %v2660_v14  ;;  %2661 = vmatmul.msk.f32.vlgmr.msra.gmra.mxu0 %vm350_vm0, %v2659_v15 }
  0x8a   : > { %470 = vmatpush.msrb.mxu0 %v330_v1  ;;  %v2706_v1 = vld [vmem:[%s3688_s1 + $0x68] sm:$0xff] }
  0x8c   : > { %v509_v21 = vpop.permute.xlu1 %508  ;;  %v343_v22 = vpop.permute.xlu0 %342 }
  0x8d   : > { %418 = vmatpush.msra.mxu2 %v343_v22  ;;  %v346_v26 = vsel %vm344_vm1, %v2836_v12, %v343_v22  ;;  %v512_v27 = vsel %vm510_vm2, %v2841_v18, %v509_v21  ;;  %583 = vmatpush.msra.mxu0 %v509_v21  ;;  %v2869_v57 = vpop.permute.xlu2 %2868 }
  0x8e   : > { %395 = vmatpush.msrb.mxu1 %v346_v26  ;;  %2665 = vmatmul.msk.f32.vlgmr.msra.gmra.mxu2 %vm350_vm0, %v2659_v15  ;;  %v2871_v58 = vunpack.i.h.bf16 %v2869_v57 }
  0x8f   : > { %560 = vmatpush.msrb.mxu3 %v512_v27  ;;  %537 = vmatpush.msrb.mxu2 %v511_v23 }
  0x90   : > { %2677 = vmatmul.msk.f32.vlgmr.msrb.gmra.mxu3 %vm350_vm0, %v2673_v28  ;;  %493 = vmatpush.msra.mxu1 %v3081_v2  ;;  %v2870_v2 = vunpack.i.l.bf16 %v2869_v57 }
  0x91   : > { %2663 = vmatmul.msk.f32.vlgmr.msrb.gmra.mxu1 %vm350_vm0, %v2659_v15  ;;  %2669 = vmatmul.msk.f32.vlgmr.msrb.gmra.mxu0 %vm350_vm0, %v3094_v5 }
  0x92   : > { %679 = vmatpush.msra.mxu3 %v2846_v29  ;;  %633 = vmatpush.msrb.mxu1 %v607_v30 }
  0x93   : > { %656 = vmatpush.msra.mxu2 %v608_v31 }
  0x94   : > { %825 = vmatpush.msrb.mxu3 %v799_v32  ;;  %v2849_v33 = vpop.permute.xlu0 %2848  ;;  %v699_v34 = vpop.permute.xlu1 %698 }
  0x95   : > { %v2851_v36 = vunpack.i.h.bf16 %v2849_v33  ;;  %v2850_v38 = vunpack.i.l.bf16 %v2849_v33  ;;  %v449_v13 = vpop.f32.mrf.mxu3 }
  0x96   : > { %2666 = vmatmul.msk.f32.gmra.mxu2 %vm350_vm0, %v2660_v14 }
  0x97   : > { %v703_v37 = vsel %vm702_vm5, %v2851_v36, %v699_v34  ;;  %v704_v43 = vsel %vm702_vm5, %v699_v34, %v2850_v38 }
  0x98   : > { %2678 = vmatmul.msk.f32.gmra.mxu3 %vm350_vm0, %v2674_v35  ;;  %729 = vmatpush.msrb.mxu0 %v703_v37 }
  0x99   : > { %2664 = vmatmul.msk.f32.gmra.mxu1 %vm350_vm0, %v2660_v14  ;;  %2670 = vmatmul.msk.f32.gmra.mxu0 %vm350_vm0, %v3115_v7 }
  0x9c   : > { %v2859_v39 = vpop.permute.xlu0 %2858  ;;  %v797_v45 = vpop.permute.xlu1 %796 }
  0x9d   : > { %v2861_v42 = vunpack.i.h.bf16 %v2859_v39  ;;  %v800_v46 = vsel %vm798_vm4, %v2856_v24, %v797_v45  ;;  %v2860_v48 = vunpack.i.l.bf16 %v2859_v39  ;;  %v452_v17 = vpop.f32.mrf.mxu3 }
  0x9e   : > { %2675 = vmatmul.msk.f32.vlgmr.msrb.gmra.mxu2 %vm350_vm0, %v2673_v28 }
  0x9f   : > { %775 = vmatpush.msrb.mxu2 %v2850_v38  ;;  %v896_v44 = vsel %vm894_vm6, %v2861_v42, %v893_v40  ;;  %v895_v50 = vsel %vm894_vm6, %v2860_v48, %v2861_v42 }
  0xa0   : > { %2687 = vmatmul.msk.f32.vlgmr.msra.gmra.mxu3 %vm350_vm0, %v2681_v41 }
  0xa1   : > { %2671 = vmatmul.msk.f32.vlgmr.msra.gmra.mxu1 %vm350_vm0, %v3094_v5  ;;  %2679 = vmatmul.msk.f32.vlgmr.msra.gmra.mxu0 %vm350_vm0, %v2673_v28  ;;  %v2714_v5 = vld [vmem:[%s3688_s1 + $0x78] sm:$0xff] }
  0xa2   : > { %752 = vmatpush.msra.mxu1 %v704_v43  ;;  %944 = vmatpush.msra.mxu3 %v896_v44 }
  0xa3   : > { %848 = vmatpush.msra.mxu0 %v800_v46 }
  0xa4   : > { %v2864_v49 = vpop.permute.xlu0 %2863  ;;  %v985_v59 = vpop.permute.xlu1 %984 }
  0xa5   : > { %v2866_v53 = vunpack.i.h.bf16 %v2864_v49  ;;  %v2865_v56 = vunpack.i.l.bf16 %v2864_v49 }
  0xa6   : > { %2676 = vmatmul.msk.f32.gmra.mxu2 %vm350_vm0, %v2674_v35 }
  0xa7   : > { %v992_v60 = vsel %vm990_vm7, %v2865_v56, %v2866_v53  ;;  %v991_v63 = vsel %vm990_vm7, %v985_v59, %v2865_v56 }
  0xa8   : > { %2688 = vmatmul.msk.f32.gmra.mxu3 %vm350_vm0, %v2682_v47 }
  0xa9   : > { %2672 = vmatmul.msk.f32.gmra.mxu1 %vm350_vm0, %v3115_v7  ;;  %2680 = vmatmul.msk.f32.gmra.mxu0 %vm350_vm0, %v2674_v35  ;;  %v3019_v7 = vmov 0  }
  0xaa   : > { %2872 = vset.pattern.permute.xlu1 %v3019_v7  ;;  %2873 = vset.pattern.permute.xlu2 %v3019_v7 }
  0xab   : > { %1182 = vperm.xlu1 %2872, %v1174_v6   ;;  %2874 = vset.pattern.permute.xlu0 %v3019_v7 }
  0xac   : > { %v1083_v62 = vpop.permute.xlu0 %1082  ;;  %1177 = vperm.xlu2 %2873, %v1173_v10  }
  0xad   : > { %v1087_v0 = vsel %vm1086_vm8, %v2871_v58, %v1083_v62  ;;  %v1088_v4 = vsel %vm1086_vm8, %v1083_v62, %v2870_v2 }
  0xae   : > { %2685 = vmatmul.msk.f32.vlgmr.msra.gmra.mxu2 %vm350_vm0, %v2681_v41 }
  0xaf   : > { %921 = vmatpush.msra.mxu2 %v895_v50 }
  0xb0   : > { %2699 = vmatmul.msk.f32.vlgmr.msrb.gmra.mxu3 %vm350_vm0, %v2697_v51 }
  0xb1   : > { %2683 = vmatmul.msk.f32.vlgmr.msrb.gmra.mxu1 %vm350_vm0, %v2681_v41  ;;  %2691 = vmatmul.msk.f32.vlgmr.msrb.gmra.mxu0 %vm350_vm0, %v2689_v52 }
  0xb2   : > { %1063 = vmatpush.msrb.mxu3 %v2866_v53  ;;  %871 = vmatpush.msrb.mxu1 %v797_v45 }
  0xb3   : > { %967 = vmatpush.msrb.mxu0 %v893_v40 }
  0xb6   : > { %2686 = vmatmul.msk.f32.gmra.mxu2 %vm350_vm0, %v2682_v47 }
  0xb8   : > { %2700 = vmatmul.msk.f32.gmra.mxu3 %vm350_vm0, %v2698_v54 }
  0xb9   : > { %2684 = vmatmul.msk.f32.gmra.mxu1 %vm350_vm0, %v2682_v47  ;;  %2692 = vmatmul.msk.f32.gmra.mxu0 %vm350_vm0, %v2690_v55 }
  0xbe   : > { %2695 = vmatmul.msk.f32.vlgmr.msrb.gmra.mxu2 %vm350_vm0, %v2689_v52 }
  0xbf   : > { %1040 = vmatpush.msrb.mxu2 %v992_v60 }
  0xc0   : > { %2709 = vmatmul.msk.f32.vlgmr.msra.gmra.mxu3 %vm350_vm0, %v2705_v61 }
  0xc1   : > { %2693 = vmatmul.msk.f32.vlgmr.msra.gmra.mxu1 %vm350_vm0, %v2689_v52  ;;  %2701 = vmatmul.msk.f32.vlgmr.msra.gmra.mxu0 %vm350_vm0, %v2697_v51 }
  0xc2   : > { %1017 = vmatpush.msra.mxu1 %v991_v63  ;;  %1113 = vmatpush.msra.mxu0 %v1087_v0 }
  0xc6   : > { %2696 = vmatmul.msk.f32.gmra.mxu2 %vm350_vm0, %v2690_v55 }
  0xc8   : > { %2710 = vmatmul.msk.f32.gmra.mxu3 %vm350_vm0, %v2706_v1 }
  0xc9   : > { %2694 = vmatmul.msk.f32.gmra.mxu1 %vm350_vm0, %v2690_v55  ;;  %2702 = vmatmul.msk.f32.gmra.mxu0 %vm350_vm0, %v2698_v54 }
  0xce   : > { %2707 = vmatmul.msk.f32.vlgmr.msra.gmra.mxu2 %vm350_vm0, %v2705_v61 }
  0xcf   : > { %1159 = vmatpush.msra.mxu2 %v2870_v2 }
  0xd0   : > { %2719 = vmatmul.msk.f32.vlgmr.msrb.gmra.mxu3 %vm350_vm0, %v2713_v3 }
  0xd1   : > { %2703 = vmatmul.msk.f32.vlgmr.msrb.gmra.mxu1 %vm350_vm0, %v2697_v51  ;;  %2711 = vmatmul.msk.f32.vlgmr.msrb.gmra.mxu0 %vm350_vm0, %v2705_v61 }
  0xd2   : > { %1136 = vmatpush.msrb.mxu1 %v1088_v4 }
  0xd6   : > { %2708 = vmatmul.msk.f32.gmra.mxu2 %vm350_vm0, %v2706_v1 }
  0xd8   : > { %2720 = vmatmul.msk.f32.gmra.mxu3 %vm350_vm0, %v2714_v5 }
  0xd9   : > { %2704 = vmatmul.msk.f32.gmra.mxu1 %vm350_vm0, %v2698_v54  ;;  %2712 = vmatmul.msk.f32.gmra.mxu0 %vm350_vm0, %v2706_v1 }
  0xde   : > { %2717 = vmatmul.msk.f32.vlgmr.msrb.gmra.mxu2 %vm350_vm0, %v2713_v3 }
  0xe1   : > { %2715 = vmatmul.msk.f32.vlgmr.msra.gmra.mxu1 %vm350_vm0, %v2713_v3  ;;  %2723 = vmatmul.msk.f32.vlgmr.msra.gmra.mxu0 %vm350_vm0, %v2721_v8 }
  0xe6   : > { %2718 = vmatmul.msk.f32.gmra.mxu2 %vm350_vm0, %v2714_v5 }
  0xe9   : > { %2716 = vmatmul.msk.f32.gmra.mxu1 %vm350_vm0, %v2714_v5  ;;  %2724 = vmatmul.msk.f32.gmra.mxu0 %vm350_vm0, %v2722_v9 }
  0xee   : > { %2727 = vmatmul.msk.f32.vlgmr.msra.gmra.mxu2 %vm350_vm0, %v2721_v8 }
  0xf1   : > { %2725 = vmatmul.msk.f32.vlgmr.msrb.gmra.mxu1 %vm350_vm0, %v2721_v8 }
  0xf6   : > { %2728 = vmatmul.msk.f32.gmra.mxu2 %vm350_vm0, %v2722_v9 }
  0xf9   : > { %2726 = vmatmul.msk.f32.gmra.mxu1 %vm350_vm0, %v2722_v9 }
 0x106   : > { %v377_v11 = vpop.f32.mrf.mxu1  ;;  %v374_v12 = vpop.f32.mrf.mxu0 }
 0x107   : > { %v450_v50 = vadd.f32 %v449_v13, %v374_v12  ;;  %v453_v60 = vadd.f32 %v452_v17, %v377_v11 }
 0x10e   : > { %v397_v14 = vpop.f32.mrf.mxu1  ;;  %v472_v15 = vpop.f32.mrf.mxu0 }
 0x10f   : > { %v473_v52 = vadd.f32 %v472_v15, %v397_v14 }
 0x111   : > { %v420_v16 = vpop.f32.mrf.mxu2 }
 0x113   : > { %v562_v21 = vpop.f32.mrf.mxu3 }
 0x114   : > { %v592_v58 = vadd.f32 %v562_v21, %v473_v52 }
 0x116   : > { %v400_v18 = vpop.f32.mrf.mxu1  ;;  %v475_v19 = vpop.f32.mrf.mxu0 }
 0x117   : > { %v476_v1 = vadd.f32 %v475_v19, %v400_v18 }
 0x119   : > { %v423_v20 = vpop.f32.mrf.mxu2 }
 0x11b   : > { %v565_v25 = vpop.f32.mrf.mxu3 }
 0x11c   : > { %v595_v10 = vadd.f32 %v565_v25, %v476_v1  ;;  %v326_v25 = vld [vmem:[%s3693_s6] sm:$0x7] }
 0x11e   : > { %v495_v22 = vpop.f32.mrf.mxu1  ;;  %v585_v23 = vpop.f32.mrf.mxu0 }
 0x11f   : > { %v496_v54 = vadd.f32 %v495_v22, %v420_v16 }
 0x121   : > { %v539_v24 = vpop.f32.mrf.mxu2  ;;  %v593_v59 = vadd.f32 %v585_v23, %v496_v54  ;;  %v1183_v54 = vpop.permute.xlu1 %1182 }
 0x122   : > { %v591_v53 = vadd.f32 %v539_v24, %v450_v50 }
 0x123   : > { %v681_v31 = vpop.f32.mrf.mxu3 }
 0x124   : > { %v689_v4 = vadd.f32 %v681_v31, %v593_v59  ;;  %v1178_v31 = vpop.permute.xlu2 %1177 }
 0x126   : > { %v498_v26 = vpop.f32.mrf.mxu1  ;;  %v588_v27 = vpop.f32.mrf.mxu0 }
 0x127   : > { %v499_v5 = vadd.f32 %v498_v26, %v423_v20 }
 0x129   : > { %v542_v28 = vpop.f32.mrf.mxu2  ;;  %v596_v14 = vadd.f32 %v588_v27, %v499_v5 }
 0x12a   : > { %v594_v2 = vadd.f32 %v542_v28, %v453_v60 }
 0x12b   : > { %v684_v35 = vpop.f32.mrf.mxu3 }
 0x12c   : > { %v692_v24 = vadd.f32 %v684_v35, %v596_v14 }
 0x12e   : > { %v635_v29 = vpop.f32.mrf.mxu1  ;;  %v731_v30 = vpop.f32.mrf.mxu0 }
 0x12f   : > { %v687_v55 = vadd.f32 %v635_v29, %v591_v53 }
 0x131   : > { %v658_v32 = vpop.f32.mrf.mxu2  ;;  %v783_v61 = vadd.f32 %v731_v30, %v687_v55 }
 0x132   : > { %v688_v62 = vadd.f32 %v658_v32, %v592_v58 }
 0x133   : > { %v827_v40 = vpop.f32.mrf.mxu3 }
 0x134   : > { %v879_v6 = vadd.f32 %v827_v40, %v783_v61 }
 0x136   : > { %v638_v33 = vpop.f32.mrf.mxu1  ;;  %v734_v34 = vpop.f32.mrf.mxu0 }
 0x137   : > { %v690_v7 = vadd.f32 %v638_v33, %v594_v2 }
 0x139   : > { %v661_v36 = vpop.f32.mrf.mxu2  ;;  %v786_v11 = vadd.f32 %v734_v34, %v690_v7 }
 0x13a   : > { %v691_v17 = vadd.f32 %v661_v36, %v595_v10  ;;  %v3249_v36 = vperm.slane %v326_v25, 1  ;;  %v2729_v10 = vld [vmem:[%s3267_s30 + $0x10] sm:$0xff] }
 0x13b   : > { %v830_v44 = vpop.f32.mrf.mxu3 }
 0x13c   : > { %v882_v20 = vadd.f32 %v830_v44, %v786_v11  ;;  %v3251_v44 = vperm.slane %v326_v25, 0 }
 0x13e   : > { %v754_v37 = vpop.f32.mrf.mxu1  ;;  %v850_v38 = vpop.f32.mrf.mxu0 }
 0x13f   : > { %v784_v3 = vadd.f32 %v754_v37, %v688_v62 }
 0x141   : > { %v777_v39 = vpop.f32.mrf.mxu2  ;;  %v880_v12 = vadd.f32 %v850_v38, %v784_v3 }
 0x142   : > { %v785_v8 = vadd.f32 %v777_v39, %v689_v4 }
 0x143   : > { %v946_v49 = vpop.f32.mrf.mxu3 }
 0x144   : > { %v976_v23 = vadd.f32 %v946_v49, %v880_v12 }
 0x146   : > { %v757_v41 = vpop.f32.mrf.mxu1  ;;  %v853_v43 = vpop.f32.mrf.mxu0 }
 0x147   : > { %v787_v18 = vadd.f32 %v757_v41, %v691_v17 }
 0x149   : > { %v780_v42 = vpop.f32.mrf.mxu2  ;;  %v883_v32 = vadd.f32 %v853_v43, %v787_v18 }
 0x14a   : > { %v788_v30 = vadd.f32 %v780_v42, %v692_v24 }
 0x14b   : > { %v949_v63 = vpop.f32.mrf.mxu3 }
 0x14e   : > { %v873_v45 = vpop.f32.mrf.mxu1  ;;  %v969_v47 = vpop.f32.mrf.mxu0 }
 0x14f   : > { %v881_v15 = vadd.f32 %v873_v45, %v785_v8 }
 0x151   : > { %v923_v46 = vpop.f32.mrf.mxu2  ;;  %v977_v28 = vadd.f32 %v969_v47, %v881_v15  ;;  %v979_v47 = vadd.f32 %v949_v63, %v883_v32 }
 0x152   : > { %v975_v13 = vadd.f32 %v923_v46, %v879_v6  ;;  %v3253_v46 = vperm.slane %v326_v25, 2 }
 0x153   : > { %v1065_v19 = vpop.f32.mrf.mxu3 }
 0x154   : > { %v1073_v37 = vadd.f32 %v1065_v19, %v977_v28 }
 0x156   : > { %v876_v48 = vpop.f32.mrf.mxu1  ;;  %v972_v56 = vpop.f32.mrf.mxu0 }
 0x157   : > { %v884_v38 = vadd.f32 %v876_v48, %v788_v30 }
 0x159   : > { %v926_v51 = vpop.f32.mrf.mxu2  ;;  %v980_v43 = vadd.f32 %v972_v56, %v884_v38 }
 0x15a   : > { %v978_v33 = vadd.f32 %v926_v51, %v882_v20 }
 0x15b   : > { %v1068_v51 = vpop.f32.mrf.mxu3 }
 0x15c   : > { %v1076_v60 = vadd.f32 %v1068_v51, %v980_v43 }
 0x15e   : > { %v1019_v57 = vpop.f32.mrf.mxu1  ;;  %v1115_v16 = vpop.f32.mrf.mxu0 }
 0x15f   : > { %v1071_v21 = vadd.f32 %v1019_v57, %v975_v13 }
 0x161   : > { %v1042_v0 = vpop.f32.mrf.mxu2  ;;  %v1167_v26 = vadd.f32 %v1115_v16, %v1071_v21 }
 0x162   : > { %v1072_v29 = vadd.f32 %v1042_v0, %v976_v23 }
 0x163   : > { %v1185_v39 = vadd.f32 %v1178_v31, %v1167_v26 }
 0x165   : > { %v1203_v48 = vmul.f32 %v3251_v44, %v1185_v39 }
 0x166   : > { %v1022_v9 = vpop.f32.mrf.mxu1  ;;  %v1118_v42 = vpop.f32.mrf.mxu0 }
 0x167   : > { %v1074_v35 = vadd.f32 %v1022_v9, %v978_v33  ;;  %v1191_v9 = vld [vmem:[%s3267_s30] sm:$0xff]  ;;  %v1192_v33 = vld [vmem:[%s3267_s30 + $0x8] sm:$0xff] }
 0x169   : > { %v1045_v22 = vpop.f32.mrf.mxu2  ;;  %v1170_v52 = vadd.f32 %v1118_v42, %v1074_v35 }
 0x16a   : > { %v1075_v53 = vadd.f32 %v1045_v22, %v979_v47 }
 0x16b   : > { %v1188_v62 = vadd.f32 %v1183_v54, %v1170_v52 }
 0x16d   : > { %v1206_v4 = vmul.f32 %v3251_v44, %v1188_v62 }
 0x16e   : > { %v1138_v27 = vpop.f32.mrf.mxu1 }
 0x16f   : > { %v1168_v34 = vadd.f32 %v1138_v27, %v1072_v29 }
 0x171   : > { %v1186_v40 = vadd.f32 %v1178_v31, %v1168_v34  ;;  %v1161_v41 = vpop.f32.mrf.mxu2 }
 0x172   : > { %v1169_v45 = vadd.f32 %v1161_v41, %v1073_v37  ;;  %v2730_v41 = vld [vmem:[%s3267_s30 + $0x18] sm:$0xff] }
 0x173   : > { %v1204_v49 = vmul.f32 %v3249_v36, %v1186_v40 }
 0x174   : > { %v1187_v50 = vadd.f32 %v1178_v31, %v1169_v45 }
 0x175   : > { %v1209_v59 = vadd.f32 %v1204_v49, %v1203_v48 }
 0x176   : > { %v1141_v55 = vpop.f32.mrf.mxu1  ;;  %v1205_v57 = vmul.f32 %v3253_v46, %v1187_v50 }
 0x177   : > { %v1171_v58 = vadd.f32 %v1141_v55, %v1075_v53 }
 0x178   : > { %v1211_v61 = vsel %vm1210_vm9, %v1205_v57, 0.0 }
 0x179   : > { %v1189_v63 = vadd.f32 %v1183_v54, %v1171_v58  ;;  %v1164_v56 = vpop.f32.mrf.mxu2  ;;  %v1212_v0 = vadd.f32 %v1211_v61, %v1209_v59 }
 0x17a   : > { %v1172_v1 = vadd.f32 %v1164_v56, %v1076_v60  ;;  %v3020_v60 = vmov 0.0  }
 0x17b   : > { %v1207_v2 = vmul.f32 %v3249_v36, %v1189_v63  ;;  %1213 = vadd.xlane.f32.xlu1 %v1212_v0  ;;  %1330 = vst [vmem:[#allocation2] sm:$0xff] %v3020_v60 }
 0x17c   : > { %v1190_v3 = vadd.f32 %v1183_v54, %v1172_v1  ;;  %1334 = vst [vmem:[#allocation2 + $0x18] sm:$0xff] %v3020_v60 }
 0x17d   : > { %v1215_v6 = vadd.f32 %v1207_v2, %v1206_v4 }
 0x17e   : > { %v1208_v5 = vmul.f32 %v3253_v46, %v1190_v3 }
 0x180   : > { %v1216_v7 = vsel %vm1210_vm9, %v1208_v5, 0.0 }
 0x181   : > { %v1217_v8 = vadd.f32 %v1216_v7, %v1215_v6 }
 0x183   : > { %1218 = vadd.xlane.f32.xlu0 %v1217_v8 }
 0x194   : > { %1282 = vperm.xlu1 %2872, %v1191_v9  }
 0x197   : > { %1287 = vperm.xlu0 %2874, %v1192_v33  }
 0x19c   : > { %1298 = vperm.xlu1 %2872, %v2729_v10  }
 0x1ee   : > { %v1214_v12 = vpop.xlane.xlu1 %1213 }
 0x1ef   : > { %v1220_v13 = vmul.f32 0.00390625, %v1214_v12 }
 0x1f1   : > { %v1222_v14 = vsub.f32 %v1185_v39, %v1220_v13  ;;  %v1223_v15 = vsub.f32 %v1186_v40, %v1220_v13  ;;  %v3271_v16 = vsub.f32 %v1187_v50, %v1220_v13 }
 0x1f3   : > { %v1228_v11 = vmul.f32 %v1222_v14, %v3251_v44  ;;  %v1229_v17 = vmul.f32 %v1223_v15, %v3249_v36  ;;  %v1230_v21 = vmul.f32 %v3271_v16, %v3253_v46 }
 0x1f5   : > { %v1234_v22 = vmul.f32 %v1228_v11, %v1228_v11  ;;  %v1235_v23 = vmul.f32 %v1229_v17, %v1229_v17  ;;  %v1236_v18 = vmul.f32 %v1230_v21, %v1230_v21 }
 0x1f6   : > { %v1219_v19 = vpop.xlane.xlu0 %1218 }
 0x1f7   : > { %v1221_v24 = vmul.f32 0.00390625, %v1219_v19  ;;  %v1240_v28 = vadd.f32 %v1235_v23, %v1234_v22  ;;  %v1241_v20 = vsel %vm1210_vm9, %v1236_v18, 0.0 }
 0x1f9   : > { %v3278_v26 = vsub.f32 %v1188_v62, %v1221_v24  ;;  %v3280_v29 = vsub.f32 %v1189_v63, %v1221_v24  ;;  %v3282_v30 = vsub.f32 %v1190_v3, %v1221_v24  ;;  %v1242_v31 = vadd.f32 %v1241_v20, %v1240_v28 }
 0x1fb   : > { %1243 = vadd.xlane.f32.xlu2 %v1242_v31  ;;  %v1231_v25 = vmul.f32 %v3278_v26, %v3251_v44  ;;  %v1232_v27 = vmul.f32 %v3280_v29, %v3249_v36  ;;  %v1233_v32 = vmul.f32 %v3282_v30, %v3253_v46 }
 0x1fd   : > { %v1237_v34 = vmul.f32 %v1231_v25, %v1231_v25  ;;  %v1238_v37 = vmul.f32 %v1232_v27, %v1232_v27  ;;  %v1239_v38 = vmul.f32 %v1233_v32, %v1233_v32 }
 0x1ff   : > { %v1245_v39 = vadd.f32 %v1238_v37, %v1237_v34  ;;  %v1246_v35 = vsel %vm1210_vm9, %v1239_v38, 0.0 }
 0x201   : > { %v1247_v40 = vadd.f32 %v1246_v35, %v1245_v39 }
 0x203   : > { %1248 = vadd.xlane.f32.xlu2 %v1247_v40 }
 0x206   : > { %v1283_v48 = vpop.permute.xlu1 %1282 }
 0x209   : > { %v1288_v12 = vpop.permute.xlu0 %1287 }
 0x20e   : > { %v1299_v3 = vpop.permute.xlu1 %1298 }
 0x21b   : > { %1303 = vperm.xlu2 %2873, %v2730_v41  }
 0x26e   : > { %v1244_v42 = vpop.xlane.xlu2 %1243 }
 0x26f   : > { %v1250_v45 = vmul.f32 0.00390625, %v1244_v42 }
 0x271   : > { %v1252_v47 = vadd.f32 1e-05, %v1250_v45 }
 0x273   : > { %2995 = vrsqrt.f32 %v1252_v47  ;;  %vm1260_vm11 = vweird.f32 %v1252_v47 }
 0x276   : > { %v1249_v49 = vpop.xlane.xlu2 %1248 }
 0x277   : > { %v1251_v43 = vmul.f32 0.00390625, %v1249_v49 }
 0x279   : > { %v2996_v50 = vpop.eup %2995  ;;  %v1253_v51 = vadd.f32 1e-05, %v1251_v43 }
 0x27a   : > { %v1255_v52 = vmul.f32 %v2996_v50, %v1252_v47  ;;  %vm1261_vm10 = vweird.f32 %v2996_v50 }
 0x27b   : > { %2997 = vrsqrt.f32 %v1253_v51  ;;  %vm1262_vm12 = vmor %vm1260_vm11, %vm1261_vm10  ;;  %vm1270_vm14 = vweird.f32 %v1253_v51 }
 0x27c   : > { %v1256_v53 = vmul.f32 %v2996_v50, %v1255_v52 }
 0x27e   : > { %v1257_v54 = vmul.f32 0.5, %v1256_v53  ;;  %v1304_v28 = vpop.permute.xlu2 %1303 }
 0x280   : > { %v1258_v55 = vsub.f32 1.5, %v1257_v54 }
 0x281   : > { %v2998_v57 = vpop.eup %2997 }
 0x282   : > { %v1259_v58 = vmul.f32 %v2996_v50, %v1258_v55  ;;  %v1265_v59 = vmul.f32 %v2998_v57, %v1253_v51  ;;  %vm1271_vm13 = vweird.f32 %v2998_v57 }
 0x283   : > { %vm1272_vm15 = vmor %vm1270_vm14, %vm1271_vm13 }
 0x284   : > { %v1263_v61 = vsel %vm1262_vm12, %v2996_v50, %v1259_v58  ;;  %v1266_v62 = vmul.f32 %v2998_v57, %v1265_v59 }
 0x285   : > { %v1274_v63 = vmul.f32 %v1263_v61, %v1222_v14  ;;  %v1275_v56 = vmul.f32 %v1263_v61, %v1223_v15  ;;  %v1276_v10 = vmul.f32 %v1263_v61, %v3271_v16 }
 0x286   : > { %v1267_v0 = vmul.f32 0.5, %v1266_v62 }
 0x287   : > { %v1291_v1 = vmul.f32 %v1283_v48, %v1275_v56  ;;  %v1290_v2 = vmul.f32 %v1283_v48, %v1274_v63  ;;  %v1292_v16 = vmul.f32 %v1283_v48, %v1276_v10  ;;  %v2313_v56 = vld [vmem:[%s3691_s4 + $0x8] sm:$0xff] }
 0x288   : > { %v1268_v4 = vsub.f32 1.5, %v1267_v0  ;;  %v2312_v0 = vld [vmem:[%s3691_s4] sm:$0xff] }
 0x289   : > { %v1307_v5 = vadd.f32 %v1299_v3, %v1291_v1  ;;  %v1306_v6 = vadd.f32 %v1299_v3, %v1290_v2  ;;  %v1308_v25 = vadd.f32 %v1299_v3, %v1292_v16  ;;  %v3355_v1 = vld [vmem:[%s3690_s3] sm:$0xff]  ;;  %v3362_v2 = vld [vmem:[%s3690_s3 + $0x8] sm:$0xff] }
 0x28a   : > { %v1269_v7 = vmul.f32 %v2998_v57, %v1268_v4 }
 0x28b   : > { %vm1313_vm0 = vcmp.ge.f32.partialorder %v1307_v5, 0.0  ;;  %v1319_v8 = vmul.f32 0.2, %v1307_v5  ;;  %vm1312_vm10 = vcmp.ge.f32.partialorder %v1306_v6, 0.0  ;;  %v1318_v9 = vmul.f32 0.2, %v1306_v6 }
 0x28c   : > { %v1273_v13 = vsel %vm1272_vm15, %v2998_v57, %v1269_v7  ;;  %v1320_v38 = vmul.f32 0.2, %v1308_v25  ;;  %vm1314_vm14 = vcmp.ge.f32.partialorder %v1308_v25, 0.0  ;;  %vm1332_vm15 = vcmask 572416  }
 0x28d   : > { %v1277_v14 = vmul.f32 %v1273_v13, %v3278_v26  ;;  %v1278_v15 = vmul.f32 %v1273_v13, %v3280_v29  ;;  %v1279_v11 = vmul.f32 %v1273_v13, %v3282_v30  ;;  %v1325_v17 = vsel %vm1313_vm0, %v1307_v5, %v1319_v8  ;;  %1333 = vst.msk [vmem:[#allocation2 + $0x10] sm:$0xff] %vm1332_vm15, %v3020_v60 }
 0x28e   : > { %v1338_v21 = vmul.f32 %v1325_v17, %v3249_v36  ;;  %v1324_v22 = vsel %vm1312_vm10, %v1306_v6, %v1318_v9  ;;  %v1326_v35 = vsel %vm1314_vm14, %v1308_v25, %v1320_v38  ;;  %1336 = vst.msk [vmem:[#allocation2 + $0x28] sm:$0xff] %vm1332_vm15, %v3020_v60  ;;  %vm1372_vm0 = vcmask 1047704   ;;  %v2731_v6 = vld [vmem:[%s3690_s3 + $0x10] sm:$0xff] }
 0x28f   : > { %v1293_v23 = vmul.f32 %v1288_v12, %v1277_v14  ;;  %v1294_v18 = vmul.f32 %v1288_v12, %v1278_v15  ;;  %v1295_v19 = vmul.f32 %v1288_v12, %v1279_v11  ;;  %v1337_v24 = vmul.f32 %v1324_v22, %v3251_v44  ;;  %v2732_v22 = vld [vmem:[%s3690_s3 + $0x18] sm:$0xff] }
 0x290   : > { %1351 = vrot.lane.b32.xlu0 %v1338_v21, %s3021_s9  ;;  %v1339_v41 = vmul.f32 %v1326_v35, %v3253_v46  ;;  %vm1361_vm10 = vcmask 154624  }
 0x291   : > { %v1309_v20 = vadd.f32 %v1304_v28, %v1293_v23  ;;  %v1310_v31 = vadd.f32 %v1304_v28, %v1294_v18  ;;  %1349 = vrot.lane.b32.xlu2 %v1337_v24, %s3021_s9  ;;  %v1311_v26 = vadd.f32 %v1304_v28, %v1295_v19 }
 0x293   : > { %vm1316_vm11 = vcmp.ge.f32.partialorder %v1310_v31, 0.0  ;;  %v1322_v29 = vmul.f32 0.2, %v1310_v31  ;;  %vm1315_vm12 = vcmp.ge.f32.partialorder %v1309_v20, 0.0  ;;  %v1321_v30 = vmul.f32 0.2, %v1309_v20 }
 0x294   : > { %v1323_v37 = vmul.f32 0.2, %v1311_v26  ;;  %vm1317_vm13 = vcmp.ge.f32.partialorder %v1311_v26, 0.0 }
 0x295   : > { %v1328_v27 = vsel %vm1316_vm11, %v1310_v31, %v1322_v29  ;;  %v1327_v32 = vsel %vm1315_vm12, %v1309_v20, %v1321_v30  ;;  %vm1375_vm11 = vcmask 416768   ;;  %vm1419_vm12 = vcmask 130048  }
 0x296   : > { %v1341_v33 = vmul.f32 %v1328_v27, %v3249_v36  ;;  %v1340_v34 = vmul.f32 %v1327_v32, %v3251_v44  ;;  %v1329_v39 = vsel %vm1317_vm13, %v1311_v26, %v1323_v37  ;;  %v3391_v32 = vld [vmem:[%s3690_s3 + $0x20] sm:$0xff] }
 0x297   : > { %v1342_v40 = vmul.f32 %v1329_v39, %v3253_v46 }
 0x298   : > { %1357 = vrot.lane.b32.xlu1 %v1341_v33, %s3021_s9 }
 0x299   : > { %1355 = vrot.lane.b32.xlu2 %v1340_v34, %s3021_s9 }
 0x2a0   : > { %1359 = vrot.lane.b32.xlu1 %v1342_v40, %s3021_s9 }
 0x2a1   : > { %1353 = vrot.lane.b32.xlu2 %v1339_v41, %s3021_s9 }
 0x2eb   : > { %v1350_v42 = vpop.permute.xlu2 %1349 }
 0x2ec   : > { %1373 = vst.msk [vmem:[#allocation2] sm:$0xff] %vm1372_vm0, %v1350_v42 }
 0x2f3   : > { %v1356_v45 = vpop.permute.xlu2 %1355  ;;  %v1382_v49 = vld [vmem:[#allocation2] sm:$0xff] }
 0x2f4   : > { %1377 = vst.msk [vmem:[#allocation2 + $0x18] sm:$0xff] %vm1372_vm0, %v1356_v45 }
 0x2fb   : > { %v1385_v47 = vld [vmem:[#allocation2 + $0x18] sm:$0xff]  ;;  %v1354_v43 = vpop.permute.xlu2 %1353 }
 0x2fc   : > { %1515 = vmatpush.msrb.mxu2 %v1385_v47 }
 0x2fe   : > { %1516 = vmatpush.msrb.mxu2 %v1382_v49 }
 0x2ff   : > { %2739 = vmatmul.msk.f32.vlgmr.msrb.gmra.mxu2 %vm1419_vm12, %v3355_v1 }
 0x302   : > { %v1352_v50 = vpop.permute.xlu0 %1351 }
 0x303   : > { %v3307_v51 = vsel %vm1361_vm10, %v1350_v42, %v1352_v50  ;;  %v1363_v52 = vsel %vm1361_vm10, %v1352_v50, %v1354_v43  ;;  %v3405_v43 = vld [vmem:[%s3690_s3 + $0x28] sm:$0xff] }
 0x304   : > { %v2880_v53 = vpack.i.bf16 %v3307_v51, %v1382_v49  ;;  %1376 = vst.msk [vmem:[#allocation2 + $0x10] sm:$0xff] %vm1375_vm11, %v1363_v52 }
 0x306   : > { %2881 = vrot.lane.b32.xlu1 %v2880_v53, %s3012_s12 }
 0x307   : > { %2740 = vmatmul.msk.f32.gmra.mxu2 %vm1419_vm12, %v3362_v2 }
 0x30a   : > { %v1358_v48 = vpop.permute.xlu1 %1357 }
 0x30b   : > { %v3311_v54 = vsel %vm1361_vm10, %v1356_v45, %v1358_v48  ;;  %v3319_v60 = vld [vmem:[#allocation2 + $0x10] sm:$0xff] }
 0x30c   : > { %v2875_v55 = vpack.i.bf16 %v3311_v54, %v1385_v47  ;;  %v2915_v63 = vpack.i.bf16 %v3319_v60, %v3307_v51 }
 0x30e   : > { %2896 = vrot.lane.b32.xlu1 %v2880_v53, %s3011_s11  ;;  %2876 = vrot.lane.b32.xlu0 %v2875_v55, %s3012_s12 }
 0x312   : > { %v1360_v57 = vpop.permute.xlu1 %1359 }
 0x313   : > { %v1365_v58 = vsel %vm1361_vm10, %v1358_v48, %v1360_v57  ;;  %vm2579_vm10 = vcmask 523264  }
 0x314   : > { %1379 = vst.msk [vmem:[#allocation2 + $0x28] sm:$0xff] %vm1375_vm11, %v1365_v58 }
 0x316   : > { %2891 = vrot.lane.b32.xlu0 %v2875_v55, %s3011_s11 }
 0x31b   : > { %v3317_v59 = vld [vmem:[#allocation2 + $0x28] sm:$0xff] }
 0x31c   : > { %v2910_v61 = vpack.i.bf16 %v1382_v49, %v3317_v59  ;;  %v2885_v62 = vpack.i.bf16 %v3319_v60, %v3317_v59 }
 0x31e   : > { %2911 = vrot.lane.b32.xlu1 %v2910_v61, %s3013_s13  ;;  %2886 = vrot.lane.b32.xlu2 %v2885_v62, %s3012_s12 }
 0x31f   : > { %2906 = vrot.lane.b32.xlu0 %v2875_v55, %s3013_s13 }
 0x326   : > { %2926 = vrot.lane.b32.xlu1 %v2880_v53, %s3014_s16  ;;  %2901 = vrot.lane.b32.xlu2 %v2885_v62, %s3011_s11 }
 0x327   : > { %2921 = vrot.lane.b32.xlu0 %v2875_v55, %s3014_s16 }
 0x32e   : > { %2941 = vrot.lane.b32.xlu1 %v2910_v61, %s3015_s17  ;;  %2916 = vrot.lane.b32.xlu2 %v2915_v63, %s3013_s13 }
 0x32f   : > { %2936 = vrot.lane.b32.xlu0 %v2875_v55, %s3015_s17 }
 0x336   : > { %2956 = vrot.lane.b32.xlu1 %v2880_v53, %s3016_s18  ;;  %2931 = vrot.lane.b32.xlu2 %v2885_v62, %s3014_s16 }
 0x337   : > { %2951 = vrot.lane.b32.xlu0 %v2875_v55, %s3016_s18 }
 0x33e   : > { %2971 = vrot.lane.b32.xlu1 %v2910_v61, %s3017_s19  ;;  %2946 = vrot.lane.b32.xlu2 %v2915_v63, %s3015_s17 }
 0x33f   : > { %2966 = vrot.lane.b32.xlu0 %v2875_v55, %s3017_s19 }
 0x346   : > { %2986 = vrot.lane.b32.xlu1 %v2880_v53, %s3018_s20  ;;  %2961 = vrot.lane.b32.xlu2 %v2885_v62, %s3016_s18 }
 0x347   : > { %2981 = vrot.lane.b32.xlu0 %v2875_v55, %s3018_s20 }
 0x34e   : > { %2321 = vperm.xlu1 %2872, %v2313_v56   ;;  %2976 = vrot.lane.b32.xlu2 %v2915_v63, %s3017_s19  ;;  %v2753_v56 = vld [vmem:[%s3690_s3 + $0x30] sm:$0xff] }
 0x34f   : > { %2316 = vperm.xlu0 %2874, %v2312_v0  }
 0x356   : > { %2991 = vrot.lane.b32.xlu2 %v2885_v62, %s3018_s20 }
 0x378   : > { %v2887_v3 = vpop.permute.xlu2 %2886  ;;  %v2882_v7 = vpop.permute.xlu1 %2881 }
 0x379   : > { %v2888_v4 = vunpack.i.l.bf16 %v2887_v3  ;;  %v2889_v5 = vunpack.i.h.bf16 %v2887_v3  ;;  %v2884_v10 = vunpack.i.h.bf16 %v2882_v7  ;;  %v2883_v12 = vunpack.i.l.bf16 %v2882_v7 }
 0x37b   : > { %1486 = vmatpush.msra.mxu1 %v2888_v4  ;;  %v1409_v17 = vsel %vm344_vm1, %v2883_v12, %v2884_v10  ;;  %v1410_v21 = vsel %vm344_vm1, %v2884_v10, %v2889_v5 }
 0x37d   : > { %1487 = vmatpush.msra.mxu1 %v2889_v5 }
 0x37e   : > { %2737 = vmatmul.msk.f32.vlgmr.msra.gmra.mxu1 %vm1419_vm12, %v2731_v6 }
 0x380   : > { %v2902_v8 = vpop.permute.xlu2 %2901  ;;  %v2877_v9 = vpop.permute.xlu0 %2876 }
 0x381   : > { %v2879_v13 = vunpack.i.h.bf16 %v2877_v9  ;;  %v2878_v14 = vunpack.i.l.bf16 %v2877_v9  ;;  %v2897_v23 = vpop.permute.xlu1 %2896  ;;  %v2904_v18 = vunpack.i.h.bf16 %v2902_v8  ;;  %v2903_v19 = vunpack.i.l.bf16 %v2902_v8 }
 0x382   : > { %v2899_v16 = vunpack.i.h.bf16 %v2897_v23  ;;  %v2898_v20 = vunpack.i.l.bf16 %v2897_v23 }
 0x383   : > { %v1411_v15 = vsel %vm344_vm1, %v2878_v14, %v2879_v13  ;;  %v1412_v11 = vsel %vm344_vm1, %v2879_v13, %v2888_v4 }
 0x384   : > { %1440 = vmatpush.msra.mxu3 %v1411_v15  ;;  %1463 = vmatpush.msrb.mxu0 %v1412_v11  ;;  %v1585_v25 = vsel %vm510_vm2, %v2898_v20, %v2899_v16  ;;  %v1586_v27 = vsel %vm510_vm2, %v2899_v16, %v2904_v18 }
 0x386   : > { %1441 = vmatpush.msra.mxu3 %v1409_v17  ;;  %1464 = vmatpush.msrb.mxu0 %v1410_v21 }
 0x387   : > { %2733 = vmatmul.msk.f32.vlgmr.msra.gmra.mxu3 %vm1419_vm12, %v2731_v6  ;;  %2735 = vmatmul.msk.f32.vlgmr.msrb.gmra.mxu0 %vm1419_vm12, %v2731_v6 }
 0x388   : > { %v2917_v24 = vpop.permute.xlu2 %2916  ;;  %2738 = vmatmul.msk.f32.gmra.mxu1 %vm1419_vm12, %v2732_v22  ;;  %1538 = vmatpush.msrb.mxu3 %v3311_v54  ;;  %v2892_v28 = vpop.permute.xlu0 %2891 }
 0x389   : > { %1561 = vmatpush.msra.mxu0 %v3317_v59  ;;  %v2894_v31 = vunpack.i.h.bf16 %v2892_v28  ;;  %v2893_v26 = vunpack.i.l.bf16 %v2892_v28  ;;  %v2919_v41 = vunpack.i.h.bf16 %v2917_v24  ;;  %v2918_v42 = vunpack.i.l.bf16 %v2917_v24 }
 0x38a   : > { %1539 = vmatpush.msrb.mxu3 %v3307_v51 }
 0x38b   : > { %1562 = vmatpush.msra.mxu0 %v3319_v60  ;;  %v1587_v29 = vsel %vm510_vm2, %v2893_v26, %v2894_v31  ;;  %v1588_v30 = vsel %vm510_vm2, %v2894_v31, %v2903_v19  ;;  %v1692_v50 = vsel %vm606_vm3, %v2918_v42, %v2919_v41  ;;  %v2761_v31 = vld [vmem:[%s3690_s3 + $0x40] sm:$0xff]  ;;  %v2769_v26 = vld [vmem:[%s3690_s3 + $0x50] sm:$0xff] }
 0x38c   : > { %1661 = vmatpush.msra.mxu3 %v2903_v19  ;;  %1615 = vmatpush.msrb.mxu1 %v1587_v29 }
 0x38d   : > { %1638 = vmatpush.msra.mxu2 %v1588_v30 }
 0x38e   : > { %1662 = vmatpush.msra.mxu3 %v2904_v18  ;;  %1616 = vmatpush.msrb.mxu1 %v1585_v25 }
 0x38f   : > { %1639 = vmatpush.msra.mxu2 %v1586_v27  ;;  %2734 = vmatmul.msk.f32.gmra.mxu3 %vm1419_vm12, %v2732_v22 }
 0x390   : > { %2736 = vmatmul.msk.f32.gmra.mxu0 %vm1419_vm12, %v2732_v22  ;;  %v2912_v33 = vpop.permute.xlu1 %2911  ;;  %2747 = vmatmul.msk.f32.vlgmr.msrb.gmra.mxu1 %vm1419_vm12, %v3391_v32  ;;  %v2932_v34 = vpop.permute.xlu2 %2931 }
 0x391   : > { %2749 = vmatmul.msk.f32.vlgmr.msra.gmra.mxu2 %vm1419_vm12, %v3391_v32  ;;  %v2913_v37 = vunpack.i.l.bf16 %v2912_v33  ;;  %v2907_v38 = vpop.permute.xlu0 %2906  ;;  %v2914_v39 = vunpack.i.h.bf16 %v2912_v33  ;;  %v2933_v51 = vunpack.i.l.bf16 %v2932_v34  ;;  %v2934_v53 = vunpack.i.h.bf16 %v2932_v34 }
 0x392   : > { %v2909_v35 = vunpack.i.h.bf16 %v2907_v38  ;;  %v2908_v40 = vunpack.i.l.bf16 %v2907_v38 }
 0x393   : > { %1767 = vmatpush.msrb.mxu2 %v2913_v37  ;;  %v1691_v49 = vsel %vm606_vm3, %v2914_v39, %v2918_v42 }
 0x394   : > { %v1693_v45 = vsel %vm606_vm3, %v2908_v40, %v2909_v35  ;;  %v1694_v47 = vsel %vm606_vm3, %v2909_v35, %v2913_v37  ;;  %v2762_v35 = vld [vmem:[%s3690_s3 + $0x48] sm:$0xff] }
 0x395   : > { %1768 = vmatpush.msrb.mxu2 %v2919_v41  ;;  %1721 = vmatpush.msrb.mxu0 %v1693_v45  ;;  %v2770_v41 = vld [vmem:[%s3690_s3 + $0x58] sm:$0xff] }
 0x396   : > { %1744 = vmatpush.msra.mxu1 %v1694_v47 }
 0x397   : > { %1722 = vmatpush.msrb.mxu0 %v1691_v49  ;;  %2741 = vmatmul.msk.f32.vlgmr.msrb.gmra.mxu3 %vm1419_vm12, %v3355_v1  ;;  %v2777_v49 = vld [vmem:[%s3690_s3 + $0x60] sm:$0xff] }
 0x398   : > { %v2927_v52 = vpop.permute.xlu1 %2926  ;;  %1745 = vmatpush.msra.mxu1 %v1692_v50  ;;  %2743 = vmatmul.msk.f32.vlgmr.msra.gmra.mxu0 %vm1419_vm12, %v3355_v1  ;;  %v2947_v59 = vpop.permute.xlu2 %2946 }
 0x399   : > { %2748 = vmatmul.msk.f32.gmra.mxu1 %vm1419_vm12, %v3405_v43  ;;  %2750 = vmatmul.msk.f32.gmra.mxu2 %vm1419_vm12, %v3405_v43  ;;  %v2922_v48 = vpop.permute.xlu0 %2921  ;;  %v2929_v54 = vunpack.i.h.bf16 %v2927_v52  ;;  %v2928_v55 = vunpack.i.l.bf16 %v2927_v52  ;;  %v2948_v6 = vunpack.i.l.bf16 %v2947_v59  ;;  %v2949_v12 = vunpack.i.h.bf16 %v2947_v59 }
 0x39a   : > { %1873 = vmatpush.msrb.mxu1 %v2933_v51  ;;  %v2924_v57 = vunpack.i.h.bf16 %v2922_v48  ;;  %v2923_v58 = vunpack.i.l.bf16 %v2922_v48 }
 0x39b   : > { %v1797_v62 = vsel %vm702_vm5, %v2928_v55, %v2929_v54  ;;  %v1798_v63 = vsel %vm702_vm5, %v2929_v54, %v2934_v53  ;;  %v1904_v18 = vsel %vm798_vm4, %v2948_v6, %v2949_v12 }
 0x39c   : > { %1874 = vmatpush.msrb.mxu1 %v2934_v53  ;;  %v1799_v60 = vsel %vm702_vm5, %v2923_v58, %v2924_v57  ;;  %v1800_v61 = vsel %vm702_vm5, %v2924_v57, %v2933_v51  ;;  %v2778_v57 = vld [vmem:[%s3690_s3 + $0x68] sm:$0xff] }
 0x39d   : > { %1827 = vmatpush.msrb.mxu3 %v1799_v60  ;;  %1850 = vmatpush.msra.mxu0 %v1800_v61 }
 0x39f   : > { %1828 = vmatpush.msrb.mxu3 %v1797_v62  ;;  %1851 = vmatpush.msra.mxu0 %v1798_v63  ;;  %v2785_v62 = vld [vmem:[%s3690_s3 + $0x70] sm:$0xff]  ;;  %v2786_v63 = vld [vmem:[%s3690_s3 + $0x78] sm:$0xff] }
 0x3a0   : > { %v2942_v0 = vpop.permute.xlu1 %2941  ;;  %2742 = vmatmul.msk.f32.gmra.mxu3 %vm1419_vm12, %v3362_v2  ;;  %2744 = vmatmul.msk.f32.gmra.mxu0 %vm1419_vm12, %v3362_v2  ;;  %v3430_v8 = vpop.permute.xlu2 %2961  ;;  %v2754_v2 = vld [vmem:[%s3690_s3 + $0x38] sm:$0xff] }
 0x3a1   : > { %2757 = vmatmul.msk.f32.vlgmr.msra.gmra.mxu1 %vm1419_vm12, %v2753_v56  ;;  %2759 = vmatmul.msk.f32.vlgmr.msrb.gmra.mxu2 %vm1419_vm12, %v2753_v56  ;;  %v2937_v1 = vpop.permute.xlu0 %2936  ;;  %v2944_v3 = vunpack.i.h.bf16 %v2942_v0  ;;  %v2943_v9 = vunpack.i.l.bf16 %v2942_v0  ;;  %v2963_v14 = vunpack.i.l.bf16 %v3430_v8  ;;  %v2964_v19 = vunpack.i.h.bf16 %v3430_v8  ;;  %v2794_v0 = vld [vmem:[%s3690_s3 + $0x88] sm:$0xff] }
 0x3a2   : > { %v2939_v4 = vunpack.i.h.bf16 %v2937_v1  ;;  %v2938_v5 = vunpack.i.l.bf16 %v2937_v1 }
 0x3a3   : > { %v1903_v10 = vsel %vm798_vm4, %v2944_v3, %v2948_v6  ;;  %v1518_v3 = vpop.f32.mrf.mxu2 }
 0x3a4   : > { %v1905_v7 = vsel %vm798_vm4, %v2938_v5, %v2939_v4  ;;  %v1906_v15 = vsel %vm798_vm4, %v2939_v4, %v2943_v9 }
 0x3a5   : > { %1933 = vmatpush.msra.mxu2 %v1905_v7 }
 0x3a7   : > { %1934 = vmatpush.msra.mxu2 %v1903_v10 }
 0x3a8   : > { %v2957_v13 = vpop.permute.xlu1 %2956  ;;  %2751 = vmatmul.msk.f32.vlgmr.msra.gmra.mxu3 %vm1419_vm12, %v3391_v32  ;;  %2755 = vmatmul.msk.f32.vlgmr.msrb.gmra.mxu0 %vm1419_vm12, %v2753_v56  ;;  %v2977_v29 = vpop.permute.xlu2 %2976  ;;  %v2793_v56 = vld [vmem:[%s3690_s3 + $0x80] sm:$0xff] }
 0x3a9   : > { %2758 = vmatmul.msk.f32.gmra.mxu1 %vm1419_vm12, %v2754_v2  ;;  %2760 = vmatmul.msk.f32.gmra.mxu2 %vm1419_vm12, %v2754_v2  ;;  %v2952_v11 = vpop.permute.xlu0 %2951  ;;  %v2959_v17 = vunpack.i.h.bf16 %v2957_v13  ;;  %v2958_v21 = vunpack.i.l.bf16 %v2957_v13  ;;  %v2979_v32 = vunpack.i.h.bf16 %v2977_v29  ;;  %v2978_v33 = vunpack.i.l.bf16 %v2977_v29 }
 0x3aa   : > { %1956 = vmatpush.msra.mxu3 %v1906_v15  ;;  %1979 = vmatpush.msrb.mxu0 %v2943_v9  ;;  %v2954_v22 = vunpack.i.h.bf16 %v2952_v11  ;;  %v2953_v23 = vunpack.i.l.bf16 %v2952_v11 }
 0x3ab   : > { %v2009_v16 = vsel %vm894_vm6, %v2958_v21, %v2959_v17  ;;  %v2010_v20 = vsel %vm894_vm6, %v2959_v17, %v2964_v19  ;;  %v2116_v39 = vsel %vm990_vm7, %v2978_v33, %v2979_v32  ;;  %v1521_v8 = vpop.f32.mrf.mxu2 }
 0x3ac   : > { %1957 = vmatpush.msra.mxu3 %v1904_v18  ;;  %1980 = vmatpush.msrb.mxu0 %v2949_v12  ;;  %v2011_v24 = vsel %vm894_vm6, %v2953_v23, %v2954_v22  ;;  %v2012_v28 = vsel %vm894_vm6, %v2954_v22, %v2963_v14 }
 0x3ad   : > { %2039 = vmatpush.msra.mxu1 %v2011_v24  ;;  %2062 = vmatpush.msrb.mxu2 %v2012_v28 }
 0x3af   : > { %2040 = vmatpush.msra.mxu1 %v2009_v16  ;;  %2063 = vmatpush.msrb.mxu2 %v2010_v20 }
 0x3b0   : > { %v2972_v30 = vpop.permute.xlu1 %2971  ;;  %2752 = vmatmul.msk.f32.gmra.mxu3 %vm1419_vm12, %v3405_v43  ;;  %2756 = vmatmul.msk.f32.gmra.mxu0 %vm1419_vm12, %v2754_v2  ;;  %v2992_v47 = vpop.permute.xlu2 %2991 }
 0x3b1   : > { %v2973_v25 = vunpack.i.l.bf16 %v2972_v30  ;;  %2767 = vmatmul.msk.f32.vlgmr.msrb.gmra.mxu1 %vm1419_vm12, %v2761_v31  ;;  %2771 = vmatmul.msk.f32.vlgmr.msra.gmra.mxu2 %vm1419_vm12, %v2769_v26  ;;  %v2967_v27 = vpop.permute.xlu0 %2966  ;;  %v2974_v40 = vunpack.i.h.bf16 %v2972_v30  ;;  %v2993_v43 = vunpack.i.l.bf16 %v2992_v47  ;;  %v2994_v51 = vunpack.i.h.bf16 %v2992_v47 }
 0x3b2   : > { %v2969_v34 = vunpack.i.h.bf16 %v2967_v27  ;;  %v2968_v38 = vunpack.i.l.bf16 %v2967_v27 }
 0x3b3   : > { %2191 = vmatpush.msra.mxu2 %v2973_v25  ;;  %v2115_v45 = vsel %vm990_vm7, %v2974_v40, %v2978_v33 }
 0x3b4   : > { %v2118_v37 = vsel %vm990_vm7, %v2969_v34, %v2973_v25  ;;  %v2117_v42 = vsel %vm990_vm7, %v2968_v38, %v2969_v34 }
 0x3b5   : > { %2192 = vmatpush.msra.mxu2 %v2979_v32  ;;  %2168 = vmatpush.msrb.mxu1 %v2118_v37 }
 0x3b7   : > { %2169 = vmatpush.msrb.mxu1 %v2116_v39 }
 0x3b8   : > { %2763 = vmatmul.msk.f32.vlgmr.msrb.gmra.mxu3 %vm1419_vm12, %v2761_v31  ;;  %2765 = vmatmul.msk.f32.vlgmr.msra.gmra.mxu0 %vm1419_vm12, %v2761_v31  ;;  %v2987_v52 = vpop.permute.xlu1 %2986 }
 0x3b9   : > { %2768 = vmatmul.msk.f32.gmra.mxu1 %vm1419_vm12, %v2762_v35  ;;  %2085 = vmatpush.msrb.mxu3 %v2963_v14  ;;  %v2982_v50 = vpop.permute.xlu0 %2981  ;;  %v2989_v54 = vunpack.i.h.bf16 %v2987_v52  ;;  %v2988_v55 = vunpack.i.l.bf16 %v2987_v52 }
 0x3ba   : > { %2145 = vmatpush.msra.mxu0 %v2117_v42  ;;  %2772 = vmatmul.msk.f32.gmra.mxu2 %vm1419_vm12, %v2770_v41  ;;  %v2984_v53 = vunpack.i.h.bf16 %v2982_v50  ;;  %v2983_v48 = vunpack.i.l.bf16 %v2982_v50 }
 0x3bb   : > { %2086 = vmatpush.msrb.mxu3 %v2964_v19  ;;  %v2221_v60 = vsel %vm1086_vm8, %v2988_v55, %v2989_v54  ;;  %v2222_v61 = vsel %vm1086_vm8, %v2989_v54, %v2994_v51 }
 0x3bc   : > { %2146 = vmatpush.msra.mxu0 %v2115_v45  ;;  %v2223_v58 = vsel %vm1086_vm8, %v2983_v48, %v2984_v53  ;;  %v2224_v59 = vsel %vm1086_vm8, %v2984_v53, %v2993_v43 }
 0x3c0   : > { %2764 = vmatmul.msk.f32.gmra.mxu3 %vm1419_vm12, %v2762_v35  ;;  %2766 = vmatmul.msk.f32.gmra.mxu0 %vm1419_vm12, %v2762_v35 }
 0x3c1   : > { %2779 = vmatmul.msk.f32.vlgmr.msra.gmra.mxu1 %vm1419_vm12, %v2777_v49 }
 0x3c2   : > { %2297 = vmatpush.msra.mxu1 %v2993_v43  ;;  %2781 = vmatmul.msk.f32.vlgmr.msrb.gmra.mxu2 %vm1419_vm12, %v2777_v49 }
 0x3c4   : > { %2298 = vmatpush.msra.mxu1 %v2994_v51 }
 0x3c8   : > { %2773 = vmatmul.msk.f32.vlgmr.msra.gmra.mxu3 %vm1419_vm12, %v2769_v26  ;;  %2775 = vmatmul.msk.f32.vlgmr.msrb.gmra.mxu0 %vm1419_vm12, %v2769_v26 }
 0x3c9   : > { %2251 = vmatpush.msra.mxu3 %v2223_v58  ;;  %2274 = vmatpush.msrb.mxu0 %v2224_v59 }
 0x3ca   : > { %2780 = vmatmul.msk.f32.gmra.mxu1 %vm1419_vm12, %v2778_v57  ;;  %2782 = vmatmul.msk.f32.gmra.mxu2 %vm1419_vm12, %v2778_v57 }
 0x3cb   : > { %2252 = vmatpush.msra.mxu3 %v2221_v60  ;;  %2275 = vmatpush.msrb.mxu0 %v2222_v61 }
 0x3d0   : > { %2774 = vmatmul.msk.f32.gmra.mxu3 %vm1419_vm12, %v2770_v41  ;;  %2776 = vmatmul.msk.f32.gmra.mxu0 %vm1419_vm12, %v2770_v41 }
 0x3d2   : > { %2789 = vmatmul.msk.f32.vlgmr.msrb.gmra.mxu1 %vm1419_vm12, %v2785_v62  ;;  %2791 = vmatmul.msk.f32.vlgmr.msra.gmra.mxu2 %vm1419_vm12, %v2785_v62 }
 0x3d8   : > { %2783 = vmatmul.msk.f32.vlgmr.msrb.gmra.mxu3 %vm1419_vm12, %v2777_v49  ;;  %2787 = vmatmul.msk.f32.vlgmr.msra.gmra.mxu0 %vm1419_vm12, %v2785_v62 }
 0x3da   : > { %2790 = vmatmul.msk.f32.gmra.mxu1 %vm1419_vm12, %v2786_v63  ;;  %2792 = vmatmul.msk.f32.gmra.mxu2 %vm1419_vm12, %v2786_v63 }
 0x3e0   : > { %2784 = vmatmul.msk.f32.gmra.mxu3 %vm1419_vm12, %v2778_v57  ;;  %2788 = vmatmul.msk.f32.gmra.mxu0 %vm1419_vm12, %v2786_v63 }
 0x3e2   : > { %2799 = vmatmul.msk.f32.vlgmr.msra.gmra.mxu1 %vm1419_vm12, %v2793_v56 }
 0x3e8   : > { %2795 = vmatmul.msk.f32.vlgmr.msra.gmra.mxu3 %vm1419_vm12, %v2793_v56  ;;  %2797 = vmatmul.msk.f32.vlgmr.msrb.gmra.mxu0 %vm1419_vm12, %v2793_v56 }
 0x3ea   : > { %2800 = vmatmul.msk.f32.gmra.mxu1 %vm1419_vm12, %v2794_v0 }
 0x3f0   : > { %2796 = vmatmul.msk.f32.gmra.mxu3 %vm1419_vm12, %v2794_v0  ;;  %2798 = vmatmul.msk.f32.gmra.mxu0 %vm1419_vm12, %v2794_v0 }
 0x3fb   : > { %v1489_v1 = vpop.f32.mrf.mxu1 }
 0x404   : > { %v1466_v4 = vpop.f32.mrf.mxu0 }
 0x405   : > { %v1492_v5 = vpop.f32.mrf.mxu1 }
 0x40a   : > { %v1443_v6 = vpop.f32.mrf.mxu3 }
 0x40b   : > { %v1519_v7 = vadd.f32 %v1518_v3, %v1443_v6 }
 0x40d   : > { %v1469_v9 = vpop.f32.mrf.mxu0  ;;  %v1618_v10 = vpop.f32.mrf.mxu1 }
 0x40e   : > { %v1670_v2 = vadd.f32 %v1618_v10, %v1519_v7 }
 0x412   : > { %v1446_v12 = vpop.f32.mrf.mxu3 }
 0x413   : > { %v1522_v13 = vadd.f32 %v1521_v8, %v1446_v12 }
 0x414   : > { %v1641_v14 = vpop.f32.mrf.mxu2 }
 0x415   : > { %v1564_v15 = vpop.f32.mrf.mxu0 }
 0x416   : > { %v1565_v11 = vadd.f32 %v1564_v15, %v1489_v1  ;;  %v1621_v17 = vpop.f32.mrf.mxu1 }
 0x417   : > { %v1673_v21 = vadd.f32 %v1621_v17, %v1522_v13 }
 0x41a   : > { %v1541_v22 = vpop.f32.mrf.mxu3 }
 0x41b   : > { %v1542_v23 = vadd.f32 %v1541_v22, %v1466_v4 }
 0x41c   : > { %v1644_v18 = vpop.f32.mrf.mxu2 }
 0x41d   : > { %v1567_v19 = vpop.f32.mrf.mxu0  ;;  %v1671_v55 = vadd.f32 %v1641_v14, %v1542_v23 }
 0x41e   : > { %v1568_v24 = vadd.f32 %v1567_v19, %v1492_v5  ;;  %v1747_v28 = vpop.f32.mrf.mxu1 }
 0x41f   : > { %v1777_v59 = vadd.f32 %v1747_v28, %v1671_v55 }
 0x423   : > { %v1544_v16 = vpop.f32.mrf.mxu3 }
 0x424   : > { %v1545_v20 = vadd.f32 %v1544_v16, %v1469_v9  ;;  %v1770_v31 = vpop.f32.mrf.mxu2 }
 0x425   : > { %v1724_v26 = vpop.f32.mrf.mxu0 }
 0x426   : > { %v1750_v29 = vpop.f32.mrf.mxu1  ;;  %v1674_v1 = vadd.f32 %v1644_v18, %v1545_v20  ;;  %v1776_v3 = vadd.f32 %v1724_v26, %v1670_v2 }
 0x428   : > { %v1780_v9 = vadd.f32 %v1750_v29, %v1674_v1  ;;  %v2801_v1 = vld [vmem:[%s3267_s30 + $0x20] sm:$0xff] }
 0x42b   : > { %v1664_v30 = vpop.f32.mrf.mxu3 }
 0x42c   : > { %v1773_v25 = vpop.f32.mrf.mxu2  ;;  %v1672_v52 = vadd.f32 %v1664_v30, %v1565_v11  ;;  %v2317_v30 = vpop.permute.xlu0 %2316 }
 0x42d   : > { %v1727_v27 = vpop.f32.mrf.mxu0 }
 0x42e   : > { %v1876_v32 = vpop.f32.mrf.mxu1  ;;  %v1778_v57 = vadd.f32 %v1770_v31, %v1672_v52  ;;  %v1779_v19 = vadd.f32 %v1727_v27, %v1673_v21  ;;  %v2322_v52 = vpop.permute.xlu1 %2321 }
 0x430   : > { %v1884_v60 = vadd.f32 %v1876_v32, %v1778_v57 }
 0x433   : > { %v1667_v33 = vpop.f32.mrf.mxu3 }
 0x434   : > { %v1936_v38 = vpop.f32.mrf.mxu2  ;;  %v1675_v61 = vadd.f32 %v1667_v33, %v1568_v24 }
 0x435   : > { %v1853_v34 = vpop.f32.mrf.mxu0 }
 0x436   : > { %v1879_v37 = vpop.f32.mrf.mxu1  ;;  %v1883_v63 = vadd.f32 %v1853_v34, %v1777_v59  ;;  %v1781_v6 = vadd.f32 %v1773_v25, %v1675_v61 }
 0x438   : > { %v1887_v13 = vadd.f32 %v1879_v37, %v1781_v6 }
 0x43b   : > { %v1830_v39 = vpop.f32.mrf.mxu3 }
 0x43c   : > { %v1882_v8 = vadd.f32 %v1830_v39, %v1776_v3  ;;  %v2804_v3 = vld [vmem:[%s3267_s30 + $0x38] sm:$0xff] }
 0x43d   : > { %v1856_v35 = vpop.f32.mrf.mxu0  ;;  %v1939_v41 = vpop.f32.mrf.mxu2 }
 0x43e   : > { %v2042_v40 = vpop.f32.mrf.mxu1  ;;  %v1886_v11 = vadd.f32 %v1856_v35, %v1780_v9  ;;  %v1988_v17 = vadd.f32 %v1936_v38, %v1882_v8 }
 0x440   : > { %v2094_v16 = vadd.f32 %v2042_v40, %v1988_v17 }
 0x443   : > { %v1833_v42 = vpop.f32.mrf.mxu3 }
 0x444   : > { %v1885_v20 = vadd.f32 %v1833_v42, %v1779_v19 }
 0x445   : > { %v1982_v45 = vpop.f32.mrf.mxu0  ;;  %v2065_v49 = vpop.f32.mrf.mxu2 }
 0x446   : > { %v1990_v56 = vadd.f32 %v1982_v45, %v1884_v60  ;;  %v1991_v37 = vadd.f32 %v1939_v41, %v1885_v20 }
 0x447   : > { %v2045_v47 = vpop.f32.mrf.mxu1 }
 0x448   : > { %v2097_v40 = vadd.f32 %v2045_v47, %v1991_v37  ;;  %v2483_v37 = vld [vmem:[%s3694_s7 + $0x78] sm:$0xff] }
 0x449   : > { %2510 = vmatpush.msrb.mxu2 %v2483_v37 }
 0x44b   : > { %v1959_v43 = vpop.f32.mrf.mxu3 }
 0x44c   : > { %v1989_v4 = vadd.f32 %v1959_v43, %v1883_v63 }
 0x44d   : > { %v1985_v50 = vpop.f32.mrf.mxu0  ;;  %v2068_v48 = vpop.f32.mrf.mxu2 }
 0x44e   : > { %v2095_v10 = vadd.f32 %v2065_v49, %v1989_v4  ;;  %v1993_v22 = vadd.f32 %v1985_v50, %v1887_v13 }
 0x44f   : > { %v2171_v51 = vpop.f32.mrf.mxu1 }
 0x450   : > { %v2201_v24 = vadd.f32 %v2171_v51, %v2095_v10 }
 0x453   : > { %v1962_v53 = vpop.f32.mrf.mxu3 }
 0x454   : > { %v1992_v28 = vadd.f32 %v1962_v53, %v1886_v11 }
 0x455   : > { %v2148_v54 = vpop.f32.mrf.mxu0  ;;  %v2194_v5 = vpop.f32.mrf.mxu2 }
 0x456   : > { %v2098_v29 = vadd.f32 %v2068_v48, %v1992_v28  ;;  %v2200_v25 = vadd.f32 %v2148_v54, %v2094_v16 }
 0x457   : > { %v2174_v58 = vpop.f32.mrf.mxu1 }
 0x458   : > { %v2204_v21 = vadd.f32 %v2174_v58, %v2098_v29 }
 0x45b   : > { %v2088_v62 = vpop.f32.mrf.mxu3 }
 0x45c   : > { %v2096_v7 = vadd.f32 %v2088_v62, %v1990_v56 }
 0x45d   : > { %v2151_v0 = vpop.f32.mrf.mxu0  ;;  %v2197_v31 = vpop.f32.mrf.mxu2 }
 0x45e   : > { %v2202_v14 = vadd.f32 %v2194_v5, %v2096_v7  ;;  %v2203_v53 = vadd.f32 %v2151_v0, %v2097_v40  ;;  %v2495_v40 = vld [vmem:[%s3694_s7 + $0xd8] sm:$0xff] }
 0x45f   : > { %v2300_v12 = vpop.f32.mrf.mxu1 }
 0x460   : > { %v2308_v18 = vadd.f32 %v2300_v12, %v2202_v14 }
 0x462   : > { %v2326_v32 = vadd.f32 %v2317_v30, %v2308_v18 }
 0x463   : > { %v2091_v15 = vpop.f32.mrf.mxu3 }
 0x464   : > { %v2099_v2 = vadd.f32 %v2091_v15, %v1993_v22  ;;  %v2338_v43 = vmul.f32 %v2326_v32, %v3253_v46 }
 0x465   : > { %v2277_v23 = vpop.f32.mrf.mxu0 }
 0x466   : > { %v2307_v26 = vadd.f32 %v2277_v23, %v2201_v24  ;;  %v2205_v33 = vadd.f32 %v2197_v31, %v2099_v2  ;;  %v2343_v55 = vsel %vm1210_vm9, %v2338_v43, 0.0  ;;  %v2479_v43 = vld [vmem:[%s3694_s7 + $0x58] sm:$0xff] }
 0x467   : > { %v2303_v38 = vpop.f32.mrf.mxu1 }
 0x468   : > { %v2325_v39 = vadd.f32 %v2317_v30, %v2307_v26  ;;  %v2311_v49 = vadd.f32 %v2303_v38, %v2205_v33  ;;  %v2803_v33 = vld [vmem:[%s3267_s30 + $0x30] sm:$0xff] }
 0x469   : > { %v2482_v38 = vld [vmem:[%s3694_s7 + $0x70] sm:$0xff] }
 0x46a   : > { %v2337_v42 = vmul.f32 %v2325_v39, %v3249_v36  ;;  %v2329_v41 = vadd.f32 %v2322_v52, %v2311_v49  ;;  %2511 = vmatpush.msrb.mxu2 %v2482_v38  ;;  %v2496_v49 = vld [vmem:[%s3694_s7 + $0xe0] sm:$0xff] }
 0x46b   : > { %v2254_v34 = vpop.f32.mrf.mxu3 }
 0x46c   : > { %v2306_v35 = vadd.f32 %v2254_v34, %v2200_v25  ;;  %v2341_v47 = vmul.f32 %v2329_v41, %v3253_v46  ;;  %v2802_v34 = vld [vmem:[%s3267_s30 + $0x28] sm:$0xff] }
 0x46d   : > { %v2280_v45 = vpop.f32.mrf.mxu0 }
 0x46e   : > { %v2324_v27 = vadd.f32 %v2317_v30, %v2306_v35  ;;  %v2310_v51 = vadd.f32 %v2280_v45, %v2204_v21  ;;  %v2348_v56 = vsel %vm1210_vm9, %v2341_v47, 0.0  ;;  %v2498_v35 = vld [vmem:[%s3694_s7 + $0xf0] sm:$0xff]  ;;  %v2481_v45 = vld [vmem:[%s3694_s7 + $0x68] sm:$0xff]  ;;  %v2488_v47 = vld [vmem:[%s3694_s7 + $0xa0] sm:$0xff] }
 0x46f   : > { %v2497_v21 = vld [vmem:[%s3694_s7 + $0xe8] sm:$0xff]  ;;  %2512 = vmatpush.msrb.mxu2 %v2481_v45 }
 0x470   : > { %v2336_v50 = vmul.f32 %v2324_v27, %v3251_v44  ;;  %v2328_v57 = vadd.f32 %v2322_v52, %v2310_v51  ;;  %v2477_v51 = vld [vmem:[%s3694_s7 + $0x48] sm:$0xff] }
 0x472   : > { %v2342_v48 = vadd.f32 %v2337_v42, %v2336_v50  ;;  %v2340_v61 = vmul.f32 %v2328_v57, %v3249_v36  ;;  %v2478_v42 = vld [vmem:[%s3694_s7 + $0x50] sm:$0xff] }
 0x473   : > { %v2257_v54 = vpop.f32.mrf.mxu3  ;;  %v2494_v50 = vld [vmem:[%s3694_s7 + $0xd0] sm:$0xff] }
 0x474   : > { %v2309_v58 = vadd.f32 %v2257_v54, %v2203_v53  ;;  %v2344_v59 = vadd.f32 %v2343_v55, %v2342_v48  ;;  %v2476_v53 = vld [vmem:[%s3694_s7 + $0x40] sm:$0xff]  ;;  %v2491_v54 = vld [vmem:[%s3694_s7 + $0xb8] sm:$0xff]  ;;  %v2474_v55 = vld [vmem:[%s3694_s7 + $0x30] sm:$0xff] }
 0x475   : > { %v2492_v48 = vld [vmem:[%s3694_s7 + $0xc0] sm:$0xff] }
 0x476   : > { %v2327_v60 = vadd.f32 %v2322_v52, %v2309_v58  ;;  %2345 = vadd.xlane.f32.xlu2 %v2344_v59  ;;  %v2493_v52 = vld [vmem:[%s3694_s7 + $0xc8] sm:$0xff] }
 0x477   : > { %v2473_v58 = vld [vmem:[%s3694_s7 + $0x28] sm:$0xff] }
 0x478   : > { %v2339_v62 = vmul.f32 %v2327_v60, %v3251_v44  ;;  %v2489_v59 = vld [vmem:[%s3694_s7 + $0xa8] sm:$0xff] }
 0x47a   : > { %v2347_v63 = vadd.f32 %v2340_v61, %v2339_v62  ;;  %v2471_v61 = vld [vmem:[%s3694_s7 + $0x18] sm:$0xff] }
 0x47b   : > { %v2487_v62 = vld [vmem:[%s3694_s7 + $0x98] sm:$0xff] }
 0x47c   : > { %v2349_v0 = vadd.f32 %v2348_v56, %v2347_v63  ;;  %v2503_v63 = vld [vmem:[%s3694_s7 + $0x118] sm:$0xff]  ;;  %v2470_v56 = vld [vmem:[%s3694_s7 + $0x10] sm:$0xff] }
 0x47d   : > { %2568 = vmatpush.msra.mxu0 %v2503_v63 }
 0x47e   : > { %2350 = vadd.xlane.f32.xlu0 %v2349_v0  ;;  %v2486_v0 = vld [vmem:[%s3694_s7 + $0x90] sm:$0xff] }
 0x492   : > { %2414 = vperm.xlu0 %2874, %v2801_v1   ;;  %v2502_v1 = vld [vmem:[%s3694_s7 + $0x110] sm:$0xff] }
 0x493   : > { %2569 = vmatpush.msra.mxu0 %v2502_v1 }
 0x49a   : > { %2435 = vperm.xlu0 %2874, %v2804_v3  }
 0x4e9   : > { %v2346_v4 = vpop.xlane.xlu2 %2345 }
 0x4ea   : > { %v2352_v5 = vmul.f32 0.00390625, %v2346_v4  ;;  %v2469_v4 = vld [vmem:[%s3694_s7 + $0x8] sm:$0xff] }
 0x4ec   : > { %v3530_v6 = vsub.f32 %v2324_v27, %v2352_v5  ;;  %v3532_v7 = vsub.f32 %v2325_v39, %v2352_v5  ;;  %v3534_v8 = vsub.f32 %v2326_v32, %v2352_v5  ;;  %v2499_v39 = vld [vmem:[%s3694_s7 + $0xf8] sm:$0xff]  ;;  %v2480_v27 = vld [vmem:[%s3694_s7 + $0x60] sm:$0xff]  ;;  %v2485_v5 = vld [vmem:[%s3694_s7 + $0x88] sm:$0xff] }
 0x4ed   : > { %2533 = vmatpush.msrb.mxu3 %v2499_v39  ;;  %2513 = vmatpush.msrb.mxu2 %v2480_v27 }
 0x4ee   : > { %v2360_v9 = vmul.f32 %v3530_v6, %v3251_v44  ;;  %v2361_v10 = vmul.f32 %v3532_v7, %v3249_v36  ;;  %v2362_v12 = vmul.f32 %v3534_v8, %v3253_v46 }
 0x4ef   : > { %2534 = vmatpush.msrb.mxu3 %v2498_v35  ;;  %2514 = vmatpush.msrb.mxu2 %v2479_v43 }
 0x4f0   : > { %v2366_v13 = vmul.f32 %v2360_v9, %v2360_v9  ;;  %v2367_v14 = vmul.f32 %v2361_v10, %v2361_v10  ;;  %v2368_v15 = vmul.f32 %v2362_v12, %v2362_v12  ;;  %v2501_v9 = vld [vmem:[%s3694_s7 + $0x108] sm:$0xff]  ;;  %v2468_v12 = vld [vmem:[%s3694_s7] sm:$0xff] }
 0x4f1   : > { %v2351_v11 = vpop.xlane.xlu0 %2350  ;;  %2535 = vmatpush.msrb.mxu3 %v2497_v21  ;;  %2515 = vmatpush.msrb.mxu2 %v2478_v42 }
 0x4f2   : > { %v2353_v17 = vmul.f32 0.00390625, %v2351_v11  ;;  %v2372_v22 = vadd.f32 %v2367_v14, %v2366_v13  ;;  %v2373_v23 = vsel %vm1210_vm9, %v2368_v15, 0.0  ;;  %2570 = vmatpush.msra.mxu0 %v2501_v9  ;;  %v2484_v13 = vld [vmem:[%s3694_s7 + $0x80] sm:$0xff] }
 0x4f3   : > { %2536 = vmatpush.msrb.mxu3 %v2496_v49  ;;  %2516 = vmatpush.msrb.mxu2 %v2477_v51  ;;  %v2500_v14 = vld [vmem:[%s3694_s7 + $0x100] sm:$0xff] }
 0x4f4   : > { %v3543_v19 = vsub.f32 %v2327_v60, %v2353_v17  ;;  %v3545_v24 = vsub.f32 %v2328_v57, %v2353_v17  ;;  %v3547_v28 = vsub.f32 %v2329_v41, %v2353_v17  ;;  %v2374_v18 = vadd.f32 %v2373_v23, %v2372_v22  ;;  %v2475_v41 = vld [vmem:[%s3694_s7 + $0x38] sm:$0xff]  ;;  %v2490_v57 = vld [vmem:[%s3694_s7 + $0xb0] sm:$0xff]  ;;  %v2472_v60 = vld [vmem:[%s3694_s7 + $0x20] sm:$0xff]  ;;  %2571 = vmatpush.msra.mxu0 %v2500_v14 }
 0x4f5   : > { %2537 = vmatpush.msrb.mxu3 %v2495_v40  ;;  %2517 = vmatpush.msrb.mxu2 %v2476_v53 }
 0x4f6   : > { %2375 = vadd.xlane.f32.xlu1 %v2374_v18  ;;  %v2363_v2 = vmul.f32 %v3543_v19, %v3251_v44  ;;  %v2364_v16 = vmul.f32 %v3545_v24, %v3249_v36  ;;  %v2365_v20 = vmul.f32 %v3547_v28, %v3253_v46 }
 0x4f7   : > { %2538 = vmatpush.msrb.mxu3 %v2494_v50  ;;  %2518 = vmatpush.msrb.mxu2 %v2475_v41 }
 0x4f8   : > { %v2369_v31 = vmul.f32 %v2363_v2, %v2363_v2  ;;  %v2370_v26 = vmul.f32 %v2364_v16, %v2364_v16  ;;  %v2371_v30 = vmul.f32 %v2365_v20, %v2365_v20 }
 0x4f9   : > { %2539 = vmatpush.msrb.mxu3 %v2493_v52  ;;  %2519 = vmatpush.msrb.mxu2 %v2474_v55 }
 0x4fa   : > { %v2377_v29 = vadd.f32 %v2370_v26, %v2369_v31  ;;  %v2378_v25 = vsel %vm1210_vm9, %v2371_v30, 0.0 }
 0x4fb   : > { %2540 = vmatpush.msrb.mxu3 %v2492_v48  ;;  %2520 = vmatpush.msrb.mxu2 %v2473_v58 }
 0x4fc   : > { %v2379_v32 = vadd.f32 %v2378_v25, %v2377_v29 }
 0x4fd   : > { %2541 = vmatpush.msrb.mxu3 %v2491_v54  ;;  %2521 = vmatpush.msrb.mxu2 %v2472_v60 }
 0x4fe   : > { %2380 = vadd.xlane.f32.xlu2 %v2379_v32 }
 0x4ff   : > { %2542 = vmatpush.msrb.mxu3 %v2490_v57  ;;  %2522 = vmatpush.msrb.mxu2 %v2471_v61 }
 0x501   : > { %2543 = vmatpush.msrb.mxu3 %v2489_v59  ;;  %2523 = vmatpush.msrb.mxu2 %v2470_v56 }
 0x503   : > { %2544 = vmatpush.msrb.mxu3 %v2488_v47  ;;  %2524 = vmatpush.msrb.mxu2 %v2469_v4 }
 0x504   : > { %v2415_v37 = vpop.permute.xlu0 %2414 }
 0x505   : > { %2545 = vmatpush.msrb.mxu3 %v2487_v62  ;;  %2525 = vmatpush.msrb.mxu2 %v2468_v12 }
 0x507   : > { %2546 = vmatpush.msrb.mxu3 %v2486_v0 }
 0x509   : > { %2547 = vmatpush.msrb.mxu3 %v2485_v5 }
 0x50b   : > { %2548 = vmatpush.msrb.mxu3 %v2484_v13 }
 0x50c   : > { %v2436_v61 = vpop.permute.xlu0 %2435 }
 0x50f   : > { %2430 = vperm.xlu1 %2872, %v2803_v33  }
 0x516   : > { %2419 = vperm.xlu2 %2873, %v2802_v34  }
 0x569   : > { %v2376_v3 = vpop.xlane.xlu1 %2375 }
 0x56a   : > { %v2382_v10 = vmul.f32 0.00390625, %v2376_v3 }
 0x56c   : > { %v2384_v15 = vadd.f32 1e-05, %v2382_v10 }
 0x56e   : > { %2999 = vrsqrt.f32 %v2384_v15  ;;  %vm2392_vm2 = vweird.f32 %v2384_v15 }
 0x571   : > { %v2381_v11 = vpop.xlane.xlu2 %2380 }
 0x572   : > { %v2383_v17 = vmul.f32 0.00390625, %v2381_v11 }
 0x574   : > { %v3000_v22 = vpop.eup %2999  ;;  %v2385_v23 = vadd.f32 1e-05, %v2383_v17 }
 0x575   : > { %v2387_v18 = vmul.f32 %v3000_v22, %v2384_v15  ;;  %vm2393_vm1 = vweird.f32 %v3000_v22 }
 0x576   : > { %3001 = vrsqrt.f32 %v2385_v23  ;;  %vm2394_vm3 = vmor %vm2392_vm2, %vm2393_vm1  ;;  %vm2402_vm5 = vweird.f32 %v2385_v23 }
 0x577   : > { %v2388_v2 = vmul.f32 %v3000_v22, %v2387_v18 }
 0x579   : > { %v2389_v16 = vmul.f32 0.5, %v2388_v2  ;;  %v2420_v41 = vpop.permute.xlu2 %2419 }
 0x57b   : > { %v2390_v20 = vsub.f32 1.5, %v2389_v16 }
 0x57c   : > { %v3002_v31 = vpop.eup %3001 }
 0x57d   : > { %v2391_v26 = vmul.f32 %v3000_v22, %v2390_v20  ;;  %v2397_v30 = vmul.f32 %v3002_v31, %v2385_v23  ;;  %vm2403_vm4 = vweird.f32 %v3002_v31 }
 0x57e   : > { %vm2404_vm6 = vmor %vm2402_vm5, %vm2403_vm4 }
 0x57f   : > { %v2398_v29 = vmul.f32 %v3002_v31, %v2397_v30  ;;  %v2395_v25 = vsel %vm2394_vm3, %v3000_v22, %v2391_v26 }
 0x580   : > { %v2406_v32 = vmul.f32 %v2395_v25, %v3530_v6  ;;  %v2407_v33 = vmul.f32 %v2395_v25, %v3532_v7  ;;  %v2408_v34 = vmul.f32 %v2395_v25, %v3534_v8 }
 0x581   : > { %v2399_v39 = vmul.f32 0.5, %v2398_v29  ;;  %v2431_v27 = vpop.permute.xlu1 %2430 }
 0x582   : > { %v2422_v38 = vmul.f32 %v2415_v37, %v2406_v32  ;;  %v2423_v35 = vmul.f32 %v2415_v37, %v2407_v33  ;;  %v2424_v45 = vmul.f32 %v2415_v37, %v2408_v34 }
 0x583   : > { %v2400_v21 = vsub.f32 1.5, %v2399_v39 }
 0x584   : > { %v2438_v49 = vadd.f32 %v2431_v27, %v2422_v38  ;;  %v2439_v43 = vadd.f32 %v2431_v27, %v2423_v35  ;;  %v2440_v40 = vadd.f32 %v2431_v27, %v2424_v45 }
 0x585   : > { %v2401_v42 = vmul.f32 %v3002_v31, %v2400_v21 }
 0x586   : > { %vm2444_vm7 = vcmp.ge.f32.partialorder %v2438_v49, 0.0  ;;  %vm2445_vm8 = vcmp.ge.f32.partialorder %v2439_v43, 0.0  ;;  %vm2446_vm13 = vcmp.ge.f32.partialorder %v2440_v40, 0.0  ;;  %v2450_v6 = vmul.f32 0.2, %v2438_v49 }
 0x587   : > { %v2405_v7 = vsel %vm2404_vm6, %v3002_v31, %v2401_v42  ;;  %v2451_v8 = vmul.f32 0.2, %v2439_v43  ;;  %v2452_v50 = vmul.f32 0.2, %v2440_v40 }
 0x588   : > { %v2409_v51 = vmul.f32 %v2405_v7, %v3543_v19  ;;  %v2410_v52 = vmul.f32 %v2405_v7, %v3545_v24  ;;  %v2411_v53 = vmul.f32 %v2405_v7, %v3547_v28  ;;  %v2456_v48 = vsel %vm2444_vm7, %v2438_v49, %v2450_v6 }
 0x589   : > { %v2457_v54 = vsel %vm2445_vm8, %v2439_v43, %v2451_v8  ;;  %v2458_v55 = vsel %vm2446_vm13, %v2440_v40, %v2452_v50  ;;  %v2462_v57 = vmul.f32 %v2456_v48, %v3251_v44 }
 0x58a   : > { %v2425_v58 = vmul.f32 %v2420_v41, %v2409_v51  ;;  %v2426_v59 = vmul.f32 %v2420_v41, %v2410_v52  ;;  %v2427_v60 = vmul.f32 %v2420_v41, %v2411_v53  ;;  %v2463_v47 = vmul.f32 %v2457_v54, %v3249_v36 }
 0x58b   : > { %v2464_v62 = vmul.f32 %v2458_v55, %v3253_v46  ;;  %2526 = vmatmul.f32.vlgmr.msrb.gmra.mxu2 %v2462_v57 }
 0x58c   : > { %v2441_v19 = vadd.f32 %v2436_v61, %v2425_v58  ;;  %v2442_v63 = vadd.f32 %v2436_v61, %v2426_v59  ;;  %v2443_v24 = vadd.f32 %v2436_v61, %v2427_v60  ;;  %2549 = vmatmul.f32.vlgmr.msrb.gmra.mxu3 %v2463_v47 }
 0x58d   : > { %2805 = vmatmul.msk.f32.vlgmr.msra.gmra.mxu0 %vm1210_vm9, %v2464_v62 }
 0x58e   : > { %vm2449_vm14 = vcmp.ge.f32.partialorder %v2443_v24, 0.0  ;;  %v2453_v28 = vmul.f32 0.2, %v2441_v19  ;;  %v2454_v56 = vmul.f32 0.2, %v2442_v63  ;;  %vm2447_vm15 = vcmp.ge.f32.partialorder %v2441_v19, 0.0 }
 0x58f   : > { %v2455_v0 = vmul.f32 0.2, %v2443_v24  ;;  %vm2448_vm0 = vcmp.ge.f32.partialorder %v2442_v63, 0.0 }
 0x590   : > { %v2459_v1 = vsel %vm2447_vm15, %v2441_v19, %v2453_v28  ;;  %v2460_v3 = vsel %vm2448_vm0, %v2442_v63, %v2454_v56 }
 0x591   : > { %v2461_v4 = vsel %vm2449_vm14, %v2443_v24, %v2455_v0  ;;  %v2465_v5 = vmul.f32 %v2459_v1, %v3251_v44  ;;  %v2466_v9 = vmul.f32 %v2460_v3, %v3249_v36 }
 0x592   : > { %v2467_v10 = vmul.f32 %v2461_v4, %v3253_v46 }
 0x593   : > { %2529 = vmatmul.f32.gmra.mxu2 %v2465_v5 }
 0x594   : > { %2552 = vmatmul.f32.gmra.mxu3 %v2466_v9 }
 0x595   : > { %2806 = vmatmul.msk.f32.gmra.mxu0 %vm1210_vm9, %v2467_v10 }
 0x60a   : > { %v2573_v13 = vpop.f32.mrf.mxu0 }
 0x60e   : > { %v2527_v12 = vpop.f32.mrf.mxu2 }
 0x60f   : > { %v2550_v14 = vpop.f32.mrf.mxu3 }
 0x610   : > { %v2551_v15 = vadd.f32 %v2550_v14, %v2527_v12 }
 0x612   : > { %v2574_v11 = vadd.f32 %v2573_v13, %v2551_v15  ;;  %v2576_v46 = vpop.f32.mrf.mxu0 }
 0x614   : > { %2580 = vst.msk [vmem:[%s325_s26] sm:$0xff] %vm2579_vm10, %v2574_v11 }
 0x616   : > { %v2530_v44 = vpop.f32.mrf.mxu2 }
 0x617   : > { %v2553_v36 = vpop.f32.mrf.mxu3 }
 0x618   : > { %v2554_v17 = vadd.f32 %v2553_v36, %v2530_v44 }
 0x61a   : > { %v2577_v22 = vadd.f32 %v2576_v46, %v2554_v17 }
 0x61c   : > { %2581 = vst.msk [vmem:[%s325_s26 + $0x8] sm:$0xff] %vm2579_vm10, %v2577_v22 }
 0x61d PF: > { %s18_s27 = sadd.s32 1, %s3009_s27  }
 0x61e   : > { %p15_p4 = scmp.ge.s32.totalorder %s18_s27, 4  }
 0x620   :  { %17 = sbr.rel (!%p15_p4) target bundleno = 1 (0x1), region = 104 }

</bundles_post_ra>
